<compile_context>
chip_gen: v5e
topology: v5e:2x2
jax: 0.10.0
libtpu: 0.0.40
codegen_flags: <defaults>
</compile_context>

<pallas_src>
import functools

import jax
import jax.numpy as jnp
from jax.experimental import pallas as pl
from jax.experimental.pallas import tpu as pltpu

H1 = 512      # linear1 output width
K_RAW = 784   # 28*28 flattened input features


def _vae_encoder_kernel(latent, lpad, out_w, kl_lane,
                        x_ref, w1_ref, b1_ref, w23_ref, b23_ref,
                        eps_ref, out_ref):
    # x tile: (tile_b, 784) f32 -> cast to bf16 in-register (no wrapper pad).
    x = x_ref[...].astype(jnp.bfloat16)

    # linear1 + relu  (bf16 operands, f32 MXU accumulate, f32 elementwise)
    h = jnp.dot(x, w1_ref[...], preferred_element_type=jnp.float32)
    h = jnp.maximum(h + b1_ref[...], 0.0)                       # (tile_b, 512) f32

    # fused linear2 / linear3: single MXU push, lane-aligned packing
    #   cols [0:lpad)        -> mu     (valid lanes [0:latent), rest zero)
    #   cols [lpad:2*lpad)   -> log-sigma pre-activation (same layout)
    mz = jnp.dot(h.astype(jnp.bfloat16), w23_ref[...],
                 preferred_element_type=jnp.float32) + b23_ref[...]
    mu = mz[:, :lpad]                                            # 128-aligned slice
    pre = mz[:, lpad:]                                           # 128-aligned slice
    sigma = jnp.exp(pre)

    # reparameterized sample (eps zero-padded beyond `latent` in the wrapper,
    # so padded lanes give z = 0 + exp(0)*0 = 0)
    z = mu + sigma * eps_ref[...]                                # (tile_b, lpad)

    # KL per row: sum_l (sigma^2 + mu^2 - log(sigma) - 1/2); log(sigma) == pre.
    lane = jax.lax.broadcasted_iota(jnp.int32, z.shape, 1)
    kl_terms = jnp.where(lane < latent,
                         sigma * sigma + mu * mu - pre - 0.5, 0.0)
    kl_row = jnp.sum(kl_terms, axis=-1, keepdims=True)           # (tile_b, 1)

    # Lane-dense packed output: z in lanes [0:latent), per-row KL in kl_lane.
    if out_w == lpad:
        packed = jnp.where(lane == kl_lane, kl_row, z)
    else:  # latent is an exact multiple of 128 -> append 128 spare lanes
        tail = jnp.zeros((z.shape[0], out_w - lpad), jnp.float32)
        packed = jnp.concatenate([z, tail], axis=-1)
        lane_o = jax.lax.broadcasted_iota(jnp.int32, packed.shape, 1)
        packed = jnp.where(lane_o == kl_lane, kl_row, packed)
    out_ref[...] = packed


def init_params(key, latent_dims):
    """PyTorch nn.Linear-style init: U[-1/sqrt(fan_in), +1/sqrt(fan_in)]."""
    def linear_init(k, fan_in, fan_out):
        kw, kb = jax.random.split(k)
        bound = 1.0 / jnp.sqrt(fan_in)
        w = jax.random.uniform(kw, (fan_in, fan_out), jnp.float32, -bound, bound)
        b = jax.random.uniform(kb, (1, fan_out), jnp.float32, -bound, bound)
        return w, b

    k1, k2, k3 = jax.random.split(key, 3)
    w1, b1 = linear_init(k1, K_RAW, H1)
    w2, b2 = linear_init(k2, H1, latent_dims)
    w3, b3 = linear_init(k3, H1, latent_dims)
    return (w1, b1, w2, b2, w3, b3)


def pack_params(raw_params):
    """Fuse / pad / quantize params into kernel layout.

    Returns: w1  (784, 512) bf16, b1 (1, 512) f32,
             w23 (512, 2*lpad) bf16 (W2 in cols [0:latent), W3 in [lpad:lpad+latent)),
             b23 (1, 2*lpad) f32.
    """
    w1, b1, w2, b2, w3, b3 = raw_params
    latent = w2.shape[1]
    lpad = ((latent + 127) // 128) * 128            # 128-lane aligned split point

    w23 = jnp.zeros((H1, 2 * lpad), jnp.float32)
    w23 = w23.at[:, :latent].set(w2).at[:, lpad:lpad + latent].set(w3)
    b23 = jnp.zeros((1, 2 * lpad), jnp.float32)
    b23 = b23.at[:, :latent].set(b2).at[:, lpad:lpad + latent].set(b3)

    return (w1.astype(jnp.bfloat16), b1.astype(jnp.float32),
            w23.astype(jnp.bfloat16), b23)


def _pick_tile(batch):
    """Batch tile: >= 2 grid programs (keeps v7x's 2nd TensorCore busy) while
    allowing up to 1024-row tiles for big-B throughput on v5e/v6e.  VMEM is
    never the constraint here (tile 1024 working set ~13 MiB)."""
    if batch < 16:
        return batch            # single tile; full-extent block is always legal
    for t in (1024, 512, 256, 128, 64, 32, 16, 8):
        if t <= batch // 2 and batch % t == 0:
            return t
    return batch                # no clean split; full-extent fallback


def variational_encoder_forward(x_nchw, packed_params, eps):
    """x_nchw: (B, 1, 28, 28) f32; eps: (B, latent) f32 ~ N(0,1).

    Returns (z, kl): z (B, latent) f32, kl scalar f32.
    """
    w1p, b1, w23, b23 = packed_params
    B = x_nchw.shape[0]
    latent = eps.shape[1]
    lpad = w23.shape[1] // 2

    if latent < lpad:
        out_w, kl_lane = lpad, latent          # spare lane inside the z block
    else:
        out_w, kl_lane = lpad + 128, lpad      # latent is a multiple of 128

    # Flatten only (free reshape); f32 -> bf16 cast happens inside the kernel.
    x_flat = x_nchw.reshape(B, -1).astype(jnp.float32)
    assert x_flat.shape[1] == K_RAW

    # eps zero-padded to the aligned latent width (tiny; keeps kernel lane-clean).
    eps_pad = eps if latent == lpad else jnp.pad(eps, ((0, 0), (0, lpad - latent)))
    eps_pad = eps_pad.astype(jnp.float32)

    tile_b = _pick_tile(B)
    n_tiles = B // tile_b

    kernel = functools.partial(_vae_encoder_kernel, latent, lpad, out_w, kl_lane)

    flops = 2 * B * K_RAW * H1 + 2 * B * H1 * (2 * lpad)
    bytes_accessed = (
        K_RAW * H1 * 2 + H1 * (2 * lpad) * 2        # bf16 weights
        + (H1 + 2 * lpad) * 4                       # f32 biases
        + B * K_RAW * 4                             # x (f32 stream)
        + B * lpad * 4                              # eps in
        + B * out_w * 4)                            # packed z+KL out
    cost = pl.CostEstimate(flops=flops, transcendentals=B * lpad,
                           bytes_accessed=bytes_accessed)

    packed_out = pl.pallas_call(
        kernel,
        out_shape=jax.ShapeDtypeStruct((B, out_w), jnp.float32),
        grid_spec=pltpu.PrefetchScalarGridSpec(
            num_scalar_prefetch=0,
            grid=(n_tiles,),
            in_specs=[
                pl.BlockSpec((tile_b, K_RAW), lambda i: (i, 0)),       # x tile (f32)
                pl.BlockSpec((K_RAW, H1), lambda i: (0, 0)),           # W1 (VMEM-resident)
                pl.BlockSpec((1, H1), lambda i: (0, 0)),               # b1
                pl.BlockSpec((H1, 2 * lpad), lambda i: (0, 0)),        # W2|W3 fused, aligned
                pl.BlockSpec((1, 2 * lpad), lambda i: (0, 0)),         # b2|b3 fused, aligned
                pl.BlockSpec((tile_b, lpad), lambda i: (i, 0)),        # eps tile
            ],
            out_specs=pl.BlockSpec((tile_b, out_w), lambda i: (i, 0)), # z + KL packed
        ),
        compiler_params=pltpu.CompilerParams(
            dimension_semantics=("parallel",),
            vmem_limit_bytes=32 * 1024 * 1024),
        cost_estimate=cost,
    )(x_flat, w1p, b1, w23, b23, eps_pad)

    z = packed_out[:, :latent]
    kl = jnp.sum(packed_out[:, kl_lane])
    return z, kl


def _reference_forward(x_nchw, raw_params, eps):
    """Pure-JAX reference mirroring the PyTorch forward (same bf16 operand cast)."""
    w1, b1, w2, b2, w3, b3 = raw_params
    x = x_nchw.reshape(x_nchw.shape[0], -1)
    h = jax.nn.relu(
        jnp.dot(x.astype(jnp.bfloat16), w1.astype(jnp.bfloat16),
                preferred_element_type=jnp.float32) + b1)
    hb = h.astype(jnp.bfloat16)
    mu = jnp.dot(hb, w2.astype(jnp.bfloat16),
                 preferred_element_type=jnp.float32) + b2
    pre = jnp.dot(hb, w3.astype(jnp.bfloat16),
                  preferred_element_type=jnp.float32) + b3
    sigma = jnp.exp(pre)
    z = mu + sigma * eps
    kl = jnp.sum(sigma ** 2 + mu ** 2 - pre - 0.5)   # log(sigma) == pre exactly
    return z, kl


if __name__ == "__main__":
    latent_dims = 32
    B = 32   # 2 batch tiles of 16 -> grid=(2,): both v7x TensorCores get work

    key = jax.random.PRNGKey(0)
    k_x, k_p, k_eps = jax.random.split(key, 3)

    # NCHW input like MNIST: (B, 1, 28, 28) -> 784 features after flatten.
    x = jax.random.normal(k_x, (B, 1, 28, 28), dtype=jnp.float32)
    raw_params = init_params(k_p, latent_dims)
    packed_params = pack_params(raw_params)
    # N(0,1) sample for the reparameterization trick (sampled in the wrapper,
    # mirroring self.N.sample(mu.shape) in the PyTorch module).
    eps = jax.random.normal(k_eps, (B, latent_dims), dtype=jnp.float32)

    z, kl = variational_encoder_forward(x, packed_params, eps)
    z = jax.block_until_ready(z)
    kl = jax.block_until_ready(kl)

    z_ref, kl_ref = _reference_forward(x, raw_params, eps)
    assert z.shape == (B, latent_dims)
    assert jnp.allclose(z, z_ref, atol=1e-2, rtol=1e-2), \
        float(jnp.max(jnp.abs(z - z_ref)))
    assert jnp.allclose(kl, kl_ref, rtol=1e-2, atol=1.0), (float(kl), float(kl_ref))

    print("KERNEL_OK")
</pallas_src>

<mosaic_0001>
module attributes {stable_mosaic.version = 11 : i64} {
  func.func @_vae_encoder_kernel(%arg0: i32, %arg1: memref<16x784xf32, #tpu.memory_space<vmem>>, %arg2: memref<784x512xbf16, #tpu.memory_space<vmem>>, %arg3: memref<1x512xf32, #tpu.memory_space<vmem>>, %arg4: memref<512x256xbf16, #tpu.memory_space<vmem>>, %arg5: memref<1x256xf32, #tpu.memory_space<vmem>>, %arg6: memref<16x128xf32, #tpu.memory_space<vmem>>, %arg7: memref<16x128xf32, #tpu.memory_space<vmem>>) attributes {dimension_semantics = [#tpu.dimension_semantics<parallel>], iteration_bounds = array<i64: 2>, scalar_prefetch = 0 : i64, scratch_operands = 0 : i64, tpu.core_type = #tpu.core_type<tc>, window_params = [{transform_indices = @transform_0, window_bounds = array<i64: 16, 784>}, {pipeline_mode = #tpu.pipeline_mode<synchronous>, transform_indices = @transform_1, window_bounds = array<i64: 784, 512>}, {pipeline_mode = #tpu.pipeline_mode<synchronous>, transform_indices = @transform_2, window_bounds = array<i64: 1, 512>}, {pipeline_mode = #tpu.pipeline_mode<synchronous>, transform_indices = @transform_3, window_bounds = array<i64: 512, 256>}, {pipeline_mode = #tpu.pipeline_mode<synchronous>, transform_indices = @transform_4, window_bounds = array<i64: 1, 256>}, {transform_indices = @transform_5, window_bounds = array<i64: 16, 128>}, {transform_indices = @transform_6, window_bounds = array<i64: 16, 128>}]} {
    %c0 = arith.constant 0 : index
    %c0_0 = arith.constant 0 : index
    %0 = vector.load %arg1[%c0, %c0_0] : memref<16x784xf32, #tpu.memory_space<vmem>>, vector<16x784xf32>
    %1 = arith.truncf %0 : vector<16x784xf32> to vector<16x784xbf16>
    %c0_1 = arith.constant 0 : index
    %c0_2 = arith.constant 0 : index
    %2 = vector.load %arg2[%c0_1, %c0_2] : memref<784x512xbf16, #tpu.memory_space<vmem>>, vector<784x512xbf16>
    %cst = arith.constant dense<0.000000e+00> : vector<16x512xf32>
    %3 = tpu.matmul %1, %2, %cst {dimension_numbers = #tpu.dot_dimension_numbers<[1], [0], [0], [1], [0, 0, 1, 1], [], []>} : vector<16x784xbf16>, vector<784x512xbf16>, vector<16x512xf32> -> vector<16x512xf32>
    %c0_3 = arith.constant 0 : index
    %c0_4 = arith.constant 0 : index
    %4 = vector.load %arg3[%c0_3, %c0_4] : memref<1x512xf32, #tpu.memory_space<vmem>>, vector<1x512xf32>
    %5 = vector.broadcast %4 : vector<1x512xf32> to vector<16x512xf32>
    %6 = arith.addf %3, %5 : vector<16x512xf32>
    %cst_5 = arith.constant 0.000000e+00 : f32
    %7 = vector.broadcast %cst_5 : f32 to vector<16x512xf32>
    %8 = arith.maximumf %6, %7 : vector<16x512xf32>
    %9 = arith.truncf %8 : vector<16x512xf32> to vector<16x512xbf16>
    %c0_6 = arith.constant 0 : index
    %c0_7 = arith.constant 0 : index
    %10 = vector.load %arg4[%c0_6, %c0_7] : memref<512x256xbf16, #tpu.memory_space<vmem>>, vector<512x256xbf16>
    %cst_8 = arith.constant dense<0.000000e+00> : vector<16x256xf32>
    %11 = tpu.matmul %9, %10, %cst_8 {dimension_numbers = #tpu.dot_dimension_numbers<[1], [0], [0], [1], [0, 0, 1, 1], [], []>} : vector<16x512xbf16>, vector<512x256xbf16>, vector<16x256xf32> -> vector<16x256xf32>
    %c0_9 = arith.constant 0 : index
    %c0_10 = arith.constant 0 : index
    %12 = vector.load %arg5[%c0_9, %c0_10] : memref<1x256xf32, #tpu.memory_space<vmem>>, vector<1x256xf32>
    %13 = vector.broadcast %12 : vector<1x256xf32> to vector<16x256xf32>
    %14 = arith.addf %11, %13 : vector<16x256xf32>
    %15 = vector.extract_strided_slice %14 {offsets = [0, 0], sizes = [16, 128], strides = [1, 1]} : vector<16x256xf32> to vector<16x128xf32>
    %16 = vector.extract_strided_slice %14 {offsets = [0, 128], sizes = [16, 128], strides = [1, 1]} : vector<16x256xf32> to vector<16x128xf32>
    %17 = math.exp %16 : vector<16x128xf32>
    %c0_11 = arith.constant 0 : index
    %c0_12 = arith.constant 0 : index
    %18 = vector.load %arg6[%c0_11, %c0_12] : memref<16x128xf32, #tpu.memory_space<vmem>>, vector<16x128xf32>
    %19 = arith.mulf %17, %18 : vector<16x128xf32>
    %20 = arith.addf %15, %19 : vector<16x128xf32>
    %21 = tpu.iota {dimensions = array<i32: 1>} : vector<16x128xi32>
    %c32_i32 = arith.constant 32 : i32
    %22 = vector.broadcast %c32_i32 : i32 to vector<16x128xi32>
    %23 = arith.cmpi slt, %21, %22 : vector<16x128xi32>
    %24 = arith.mulf %17, %17 : vector<16x128xf32>
    %25 = arith.mulf %15, %15 : vector<16x128xf32>
    %26 = arith.addf %24, %25 : vector<16x128xf32>
    %27 = arith.subf %26, %16 : vector<16x128xf32>
    %cst_13 = arith.constant 5.000000e-01 : f32
    %28 = vector.broadcast %cst_13 : f32 to vector<16x128xf32>
    %29 = arith.subf %27, %28 : vector<16x128xf32>
    %cst_14 = arith.constant 0.000000e+00 : f32
    %30 = vector.broadcast %cst_14 : f32 to vector<16x128xf32>
    %31 = arith.select %23, %29, %30 : vector<16x128xi1>, vector<16x128xf32>
    %cst_15 = arith.constant dense<0.000000e+00> : vector<16xf32>
    %32 = vector.multi_reduction <add>, %31, %cst_15 [1] : vector<16x128xf32> to vector<16xf32>
    %33 = vector.shape_cast %32 : vector<16xf32> to vector<16x1xf32>
    %c32_i32_16 = arith.constant 32 : i32
    %34 = vector.broadcast %c32_i32_16 : i32 to vector<16x128xi32>
    %35 = arith.cmpi eq, %21, %34 : vector<16x128xi32>
    %36 = vector.shape_cast %33 : vector<16x1xf32> to vector<16x1xf32>
    %37 = vector.broadcast %36 : vector<16x1xf32> to vector<16x128xf32>
    %38 = arith.select %35, %37, %20 : vector<16x128xi1>, vector<16x128xf32>
    %c0_17 = arith.constant 0 : index
    %c0_18 = arith.constant 0 : index
    %39 = vector.load %arg7[%c0_17, %c0_18] : memref<16x128xf32, #tpu.memory_space<vmem>>, vector<16x128xf32>
    tpu.vector_store %arg7[%c0_17, %c0_18], %38 {strides = array<i32>} : memref<16x128xf32, #tpu.memory_space<vmem>>, vector<16x128xf32>,
    return
  }
  func.func @transform_0(%arg0: i32) -> (i32, i32) {
    %c0_i32 = arith.constant 0 : i32
    %c0_i32_0 = arith.constant 0 : i32
    return %arg0, %c0_i32 : i32, i32
  }
  func.func @transform_1(%arg0: i32) -> (i32, i32) {
    %c0_i32 = arith.constant 0 : i32
    %c0_i32_0 = arith.constant 0 : i32
    %c0_i32_1 = arith.constant 0 : i32
    return %c0_i32, %c0_i32_0 : i32, i32
  }
  func.func @transform_2(%arg0: i32) -> (i32, i32) {
    %c0_i32 = arith.constant 0 : i32
    %c0_i32_0 = arith.constant 0 : i32
    %c0_i32_1 = arith.constant 0 : i32
    return %c0_i32, %c0_i32_0 : i32, i32
  }
  func.func @transform_3(%arg0: i32) -> (i32, i32) {
    %c0_i32 = arith.constant 0 : i32
    %c0_i32_0 = arith.constant 0 : i32
    %c0_i32_1 = arith.constant 0 : i32
    return %c0_i32, %c0_i32_0 : i32, i32
  }
  func.func @transform_4(%arg0: i32) -> (i32, i32) {
    %c0_i32 = arith.constant 0 : i32
    %c0_i32_0 = arith.constant 0 : i32
    %c0_i32_1 = arith.constant 0 : i32
    return %c0_i32, %c0_i32_0 : i32, i32
  }
  func.func @transform_5(%arg0: i32) -> (i32, i32) {
    %c0_i32 = arith.constant 0 : i32
    %c0_i32_0 = arith.constant 0 : i32
    return %arg0, %c0_i32 : i32, i32
  }
  func.func @transform_6(%arg0: i32) -> (i32, i32) {
    %c0_i32 = arith.constant 0 : i32
    %c0_i32_0 = arith.constant 0 : i32
    return %arg0, %c0_i32 : i32, i32
  }
}

</mosaic_0001>

<bundles_post_ra>
// kernel: tpu_custom_call.1
= control target key start
LH: loop header
LB: loop body
LE: loop exit
PB: predicated region body
PF: predicated region fallthrough
CT: control target
= control target key end

     0   :  { %s4638_s0 = inlined_call_operand.hbm [shape: f32[32,784], index: 0, kind: input, shape index: {}]   ;;  %s4639_s1 = inlined_call_operand.hbm [shape: bf16[784,512], index: 1, kind: input, shape index: {}]   ;;  %s4640_s2 = inlined_call_operand.hbm [shape: f32[1,512], index: 2, kind: input, shape index: {}]   ;;  %s4641_s3 = inlined_call_operand.hbm [shape: bf16[512,256], index: 3, kind: input, shape index: {}]   ;;  %s4642_s4 = inlined_call_operand.vmem [shape: f32[1,256], index: 4, kind: input, shape index: {}]   ;;  %s4643_s5 = inlined_call_operand.hbm [shape: f32[32,128], index: 5, kind: input, shape index: {}]   ;;  %s4644_s6 = inlined_call_operand.hbm [shape: f32[32,128], index: 6, kind: output, shape index: {}]  }
   0x1   :  { %4649 = sst [smem:[#allocation20_spill]] %s4638_s0 }
   0x2   :  { %4650 = sst [smem:[#allocation21_spill]] %s4639_s1 }
   0x3   :  { %4651 = sst [smem:[#allocation22_spill]] %s4640_s2 }
   0x4   :  { %11 = vsyncpa [#allocation3], 0 }
   0x5   :  { %13 = vsyncpa [#allocation3 + $0x1], 0 }
   0x6   :  { %14 = vsyncpa [#allocation6], 0 }
   0x7   :  { %15 = vsyncpa [#allocation9], 0 }
   0x8   :  { %16 = vsyncpa [#allocation4], 0 }
   0x9   :  { %18 = vsyncpa [#allocation4 + $0x1], 0  ;;  %s4357_s21 = smov 0   ;;  %s4359_s22 = smov 0  }
   0xa   :  { %s4361_s23 = smov 0   ;;  %s4363_s24 = smov 0  }
   0xb LB: > { %4652 = sst [smem:[#allocation17_spill]] %s4305_s23  ;;  %s4378_s25 = sadd.s32 4294967295, %s4309_s24   ;;  %s4309_s24 = sphi %s4363_s24, %s4669_s24   ;;  %s4305_s23 = sphi %s4361_s23, %s4671_s23   ;;  %s4301_s22 = sphi %s4359_s22, %s4673_s22   ;;  %s4297_s21 = sphi %s4357_s21, %s4672_s21  }
   0xc   : > { %s2653_s26 = sadd.s32 4294967294, %s4309_s24   ;;  %p44_p0 = scmp.ne.s32.totalorder %s4301_s22, %s4297_s21 }
   0xd   : > { %p4646_p1 = scmp.eq.s32.totalorder %s4378_s25, 0  ;;  %p178_p2 = scmp.eq.s32.totalorder %s4378_s25, 1 }
   0xe   : > { %p184_p3 = scmp.eq.s32.totalorder %s2653_s26, 1  ;;  %p2654_p5 = scmp.ge.s32.totalorder %s4309_s24, 1 }
   0xf   : > { %p4387_p4 = por %p4646_p1, %p44_p0  ;;  %p191_p7 = scmp.lt.s32.totalorder %s4309_s24, 3 }
  0x10   : > { %p4392_p6 = por %p184_p3, %p44_p0  ;;  %s4655_s1 = sld [smem:[#allocation21_spill]] }
  0x11   : > { %p4400_p8 = pnand %p2654_p5, %p191_p7  ;;  %s4311_s9 = smov [#allocation5]  }
  0x12   : > { %s204_s10 = sshll.u32 %s4311_s9, 4  ;;  %s4414_s12 = sadd.s32 1, %s4309_s24   ;;  %s205_s10 = int_to_ptr.vmem [resolvable:$true] %s204_s10 }
  0x13   : > { %p4005_p9 = pneg %p4400_p8  ;;  %4658 = sst [smem:[#allocation18_spill]] %s4414_s12 }
  0x14   : > { %s4312_s13 = smov 256   ;;  %s4313_s14 = smov 16  }
  0x15   : > { %p4408_p10 = pnand %p4005_p9, %p4646_p1  ;;  %s28_s15 = ssub.s32 %s4309_s24, %s4414_s12 }
  0x16   : > { %s202_s7 = sshll.u32 %s4655_s1, 4  ;;  %s31_s16 = sadd.s32 1, %s4305_s23  ;;  %s203_s7 = int_to_ptr.hbm [resolvable:$true] %s202_s7 }
  0x17   : > { %4008 = dma.hbm_to_vmem [thread:$0]  (!%p4408_p10), %s203_s7, 25088, %s205_s10, [#allocation6], %s4312_s13, %s4312_s13, %s4313_s14  }
  0x18   : > { %p29_p12 = scmp.eq.s32.totalorder %s28_s15, 0  ;;  %p38_p13 = scmp.ne.s32.totalorder %s4305_s23, %s4301_s22 }
  0x19   : > { %p39_p0 = scmp.eq.s32.totalorder %s4309_s24, 0  ;;  %p4029_p3 = scmp.lt.s32.totalorder %s4309_s24, 2 }
  0x1a   : > { %s4426_s17 = scalar_select %p29_p12, %s4305_s23, %s31_s16  }
  0x1b   : > { %p40_p5 = por %p39_p0, %p38_p13  ;;  %p4430_p7 = por %p178_p2, %p38_p13 }
  0x1c   : > { %4659 = sst [smem:[#allocation19_spill]] %s4426_s17  ;;  %s247_s19 = sand.u32 1, %s4309_s24  }
  0x1d   : > { %s249_s20 = sand.u32 1, %s4305_s23   ;;  %s3985_s29 = smul.u32 112, %s4309_s24 }
  0x1e   : > { %s3984_s26 = smul.u32 112, %s249_s20  ;;  %p4437_p9 = pnand %p4029_p3, %p40_p5 }
  0x1f   : > { %s4662_s0 = sld [smem:[#allocation20_spill]]  ;;  %s4444_s16 = sshll.u32 %s249_s20, 4 }
  0x20   : > { %s251_s13 = scalar_lea.vmem [#allocation2], %s3984_s26  ;;  %s4446_s1 = scalar_lea.sflag [#allocation3], %s247_s19 }
  0x21   : > { %s260_s14 = sshll.u32 %s251_s13, 4  ;;  %p4115_p12 = pneg %p4437_p9  ;;  %s261_s14 = int_to_ptr.vmem [resolvable:$true] %s260_s14 }
  0x25   : > { %s257_s10 = scalar_lea.hbm %s4662_s0, %s3985_s29  ;;  %s4118_s7 = scalar_lea.hbm %s4662_s0, 224 }
  0x26   : > { %s258_s15 = sshll.u32 %s257_s10, 4  ;;  %s259_s15 = int_to_ptr.hbm [resolvable:$true] %s258_s15 }
  0x27   : > { %s4111_s17 = sshra.s32 %s259_s15, 4  ;;  %s4112_s17 = int_to_ptr.hbm [resolvable:$true] %s4111_s17 }
  0x28   : > { %s4113_s23 = scalar_lea.hbm %s4112_s17, 112  ;;  %p4119_p3 = scmp.lt.s32.totalorder %s4112_s17, %s4662_s0 }
  0x29   : > { %p4114_p2 = scmp.ne.s32.totalorder %s4112_s17, %s4113_s23  ;;  %p4120_p5 = scmp.lt.s32.totalorder %s4118_s7, %s4113_s23 }
  0x2b   : > { %p4116_p13 = pnand %p4115_p12, %p4114_p2  ;;  %p4121_p11 = por %p4120_p5, %p4119_p3 }
  0x2d   : > { %p4117_p0 = pneg %p4116_p13 }
  0x2f   : > { %p4122_p1 = pnand %p4121_p11, %p4117_p0 }
  0x31   : > { %4125 = shalt.err (!%p4122_p1)
}
  0x32   : > { %s4314_s19 = smov 896   ;;  %s4315_s20 = smov 56  }
  0x33   : > { %4018 = dma.hbm_to_vmem [thread:$0]  (!%p4437_p9), %s259_s15, 1792, %s261_s14, %s4446_s1, %s4314_s19, %s4314_s19, %s4315_s20  }
  0x34   : > { %s4663_s2 = sld [smem:[#allocation22_spill]]  ;;  %s4316_s17 = smov [#allocation7]  }
  0x35   : > { %s219_s23 = sshll.u32 %s4316_s17, 4  ;;  %s228_s10 = sshll.u32 %s4641_s3, 4  ;;  %s220_s23 = int_to_ptr.vmem [resolvable:$true] %s219_s23  ;;  %s229_s10 = int_to_ptr.hbm [resolvable:$true] %s228_s10 }
  0x36   : > { %s4317_s0 = smov [#allocation8]   ;;  %s3722_s14 = sshll.u32 %s4309_s24, 4 }
  0x37   : > { %s230_s12 = sshll.u32 %s4317_s0, 4  ;;  %s4318_s15 = smov 128   ;;  %s231_s12 = int_to_ptr.vmem [resolvable:$true] %s230_s12 }
  0x38   : > { %s4319_s19 = smov 8   ;;  %s279_s29 = scalar_lea.hbm %s4643_s5, %s3722_s14 }
  0x39   : > { %4014 = dma.hbm_to_vmem [thread:$0]  (!%p4408_p10), %s229_s10, 8192, %s231_s12, [#allocation9], %s4318_s15, %s4318_s15, %s4319_s19  }
  0x3a   : > { %s217_s26 = sshll.u32 %s4663_s2, 4  ;;  %s274_s17 = scalar_lea.vmem [#allocation10], %s4444_s16  ;;  %s218_s26 = int_to_ptr.hbm [resolvable:$true] %s217_s26 }
  0x3b   : > { %4011 = dma.hbm_to_vmem [thread:$0]  (!%p4408_p10), %s218_s26, 64, %s220_s23, [#allocation6]  }
  0x3c   : > { %s282_s7 = sshll.u32 %s274_s17, 4  ;;  %s280_s9 = sshll.u32 %s279_s29, 4  ;;  %s283_s7 = int_to_ptr.vmem [resolvable:$true] %s282_s7  ;;  %s281_s9 = int_to_ptr.hbm [resolvable:$true] %s280_s9 }
  0x3d   : > { %s4201_s2 = sshra.s32 %s281_s9, 4  ;;  %s4208_s12 = scalar_lea.hbm %s4643_s5, 32  ;;  %s4202_s2 = int_to_ptr.hbm [resolvable:$true] %s4201_s2 }
  0x3e   : > { %s4203_s26 = scalar_lea.hbm %s4202_s2, 16  ;;  %p4209_p10 = scmp.lt.s32.totalorder %s4202_s2, %s4643_s5 }
  0x3f   : > { %p4204_p1 = scmp.ne.s32.totalorder %s4202_s2, %s4203_s26  ;;  %p4210_p13 = scmp.lt.s32.totalorder %s4208_s12, %s4203_s26 }
  0x41   : > { %p4206_p11 = pnand %p4204_p1, %p4115_p12  ;;  %p4211_p0 = por %p4210_p13, %p4209_p10 }
  0x43   : > { %p4207_p2 = pneg %p4206_p11 }
  0x45   : > { %p4212_p3 = pnand %p4211_p0, %p4207_p2 }
  0x47   : > { %4215 = shalt.err (!%p4212_p3)
}
  0x48   : > { %4021 = dma.hbm_to_vmem [thread:$0]  (!%p4437_p9), %s281_s9, 256, %s283_s7, %s4446_s1, %s4318_s15, %s4318_s15, %s4319_s19  }
  0x49   : > { %294 = sbr.rel (%p4400_p8) target bundleno = 733 (0x2dd), region = 44  ;;  %s296_s16 = sand.u32 (!%p4400_p8), 1, %s4378_s25  }
  0x4a   : > { %s4493_s14 = sand.u32 (!%p4400_p8), 1, %s4301_s22   ;;  %s297_s2 = scalar_lea.sflag (!%p4400_p8), [#allocation3], %s296_s16 }
  0x4b   : > { %s3986_s20 = smul.u32 (!%p4400_p8), 112, %s4493_s14 }
  0x4d   : > { %s4496_s13 = scalar_lea.vmem (!%p4400_p8), [#allocation2], %s3986_s20 }
  0x4e   : > { %4276 = dma.done.wait (%p4387_p4), %s297_s2, 1792  }
  0x4f   : > { %4278 = vsyncadd (%p4387_p4), %s297_s2, 4294965504  ;;  %p4664_p9 = scmp.eq.s32.totalorder %s4378_s25, 0 }
  0x51   : > { %4280 = dma.done.wait (%p4664_p9), [#allocation6], 25152   ;;  %p4665_p8 = pmov %p4664_p9 }
  0x53   : > { %4282 = vsyncadd (%p4665_p8), [#allocation6], 4294942144  ;;  %p4666_p12 = pmov %p4665_p8 }
  0x54   : > { %p4667_p5 = pmov %p4665_p8 }
  0x55   : > { %4284 = dma.done.wait (%p4666_p12), [#allocation9], 8192  }
  0x56   : > { %4286 = vsyncadd (%p4667_p5), [#allocation9], 4294959104  ;;  %s2669_s1 = sshll.u32 %s4493_s14, 4 }
  0x57   : > { %s4513_s8 = scalar_lea.vmem [#allocation10], %s2669_s1 }
  0x58   : > { %4288 = dma.done.wait (%p4387_p4), %s297_s2, 256  }
  0x59   : > { %4290 = vsyncadd (%p4387_p4), %s297_s2, 4294967040  ;;  %v2785_v0 = vld [vmem:[#allocation5 + $0xe0] sm:$0xf]  ;;  %v3753_v1 = vld [vmem:[#allocation5 + $0xec] sm:$0xf0]  ;;  %vm1571_vm0 = vcmask 130048  }
  0x5a   : > { %v2913_v2 = vld [vmem:[#allocation5 + $0x1e0] sm:$0xf]  ;;  %v2786_v3 = vor.u32 %v3753_v1, %v2785_v0  ;;  %v3785_v4 = vld [vmem:[#allocation5 + $0x1ec] sm:$0xf0]  ;;  %s3983_s15 = sshll.u32 %s4378_s25, 4  ;;  %s359_s7 = scalar_lea.vmem [#allocation11], %s2669_s1 }
  0x5b   : > { %v3041_v5 = vld [vmem:[#allocation5 + $0x2e0] sm:$0xf]  ;;  %v3817_v6 = vld [vmem:[#allocation5 + $0x2ec] sm:$0xf0]  ;;  %v2914_v7 = vor.u32 %v3785_v4, %v2913_v2  ;;  %s2527_s17 = scalar_lea.hbm %s4644_s6, %s3983_s15  ;;  %s2528_s9 = sshll.u32 %s359_s7, 4  ;;  %s2529_s9 = int_to_ptr.vmem [resolvable:$true] %s2528_s9 }
  0x5c   : > { %v3042_v8 = vor.u32 %v3817_v6, %v3041_v5  ;;  %v3169_v9 = vld [vmem:[#allocation5 + $0x3e0] sm:$0xf]  ;;  %v3849_v10 = vld [vmem:[#allocation5 + $0x3ec] sm:$0xf0]  ;;  %1575 = vmatpush.bf16.msra.mxu0 %v2786_v3  ;;  %s2530_s26 = sshll.u32 %s2527_s17, 4  ;;  %s2516_s0 = scalar_lea.sflag [#allocation4], %s4493_s14  ;;  %s2531_s26 = int_to_ptr.hbm [resolvable:$true] %s2530_s26 }
  0x5d   : > { %v2769_v11 = vld [vmem:[#allocation5 + $0xc0] sm:$0xf]  ;;  %v3170_v12 = vor.u32 %v3849_v10, %v3169_v9  ;;  %v3749_v13 = vld [vmem:[#allocation5 + $0xcc] sm:$0xf0]  ;;  %1589 = vmatpush.bf16.msra.mxu1 %v2914_v7  ;;  %s4245_s11 = sshra.s32 %s2531_s26, 4  ;;  %s4251_s10 = scalar_lea.hbm %s4644_s6, 32  ;;  %s4246_s11 = int_to_ptr.hbm [resolvable:$true] %s4245_s11 }
  0x5e   : > { %v2897_v14 = vld [vmem:[#allocation5 + $0x1c0] sm:$0xf]  ;;  %v3781_v15 = vld [vmem:[#allocation5 + $0x1cc] sm:$0xf0]  ;;  %1603 = vmatpush.bf16.msra.mxu2 %v3042_v8  ;;  %v2770_v16 = vor.u32 %v3749_v13, %v2769_v11  ;;  %s4247_s25 = scalar_lea.hbm %s4246_s11, 16  ;;  %p4252_p2 = scmp.lt.s32.totalorder %s4246_s11, %s4644_s6 }
  0x5f   : > { %v2898_v17 = vor.u32 %v3781_v15, %v2897_v14  ;;  %v3025_v18 = vld [vmem:[#allocation5 + $0x2c0] sm:$0xf]  ;;  %v3813_v19 = vld [vmem:[#allocation5 + $0x2cc] sm:$0xf0]  ;;  %1617 = vmatpush.bf16.msra.mxu3 %v3170_v12  ;;  %p4248_p4 = scmp.ne.s32.totalorder %s4246_s11, %s4247_s25  ;;  %p4253_p10 = scmp.lt.s32.totalorder %s4251_s10, %s4247_s25 }
  0x60   : > { %v3153_v20 = vld [vmem:[#allocation5 + $0x3c0] sm:$0xf]  ;;  %v3026_v21 = vor.u32 %v3813_v19, %v3025_v18  ;;  %v3845_v22 = vld [vmem:[#allocation5 + $0x3cc] sm:$0xf0]  ;;  %1576 = vmatpush.bf16.msra.mxu0 %v2770_v16 }
  0x61   : > { %v2753_v23 = vld [vmem:[#allocation5 + $0xa0] sm:$0xf]  ;;  %v3745_v24 = vld [vmem:[#allocation5 + $0xac] sm:$0xf0]  ;;  %v3154_v25 = vor.u32 %v3845_v22, %v3153_v20  ;;  %1590 = vmatpush.bf16.msra.mxu1 %v2898_v17  ;;  %p4249_p1 = pnand %p4248_p4, %p4430_p7  ;;  %p4254_p13 = por %p4253_p10, %p4252_p2 }
  0x62   : > { %v2881_v26 = vld [vmem:[#allocation5 + $0x1a0] sm:$0xf]  ;;  %v3777_v27 = vld [vmem:[#allocation5 + $0x1ac] sm:$0xf0]  ;;  %v2754_v29 = vor.u32 %v3745_v24, %v2753_v23  ;;  %1604 = vmatpush.bf16.msra.mxu2 %v3026_v21 }
  0x63   : > { %v3009_v28 = vld [vmem:[#allocation5 + $0x2a0] sm:$0xf]  ;;  %v3809_v30 = vld [vmem:[#allocation5 + $0x2ac] sm:$0xf0]  ;;  %v2882_v33 = vor.u32 %v3777_v27, %v2881_v26  ;;  %1618 = vmatpush.bf16.msra.mxu3 %v3154_v25  ;;  %p4250_p11 = pneg %p4249_p1 }
  0x64   : > { %v3137_v31 = vld [vmem:[#allocation5 + $0x3a0] sm:$0xf]  ;;  %v3841_v32 = vld [vmem:[#allocation5 + $0x3ac] sm:$0xf0]  ;;  %v3010_v34 = vor.u32 %v3809_v30, %v3009_v28  ;;  %1577 = vmatpush.bf16.msra.mxu0 %v2754_v29 }
  0x65   : > { %v2737_v35 = vld [vmem:[#allocation5 + $0x80] sm:$0xf]  ;;  %v3741_v36 = vld [vmem:[#allocation5 + $0x8c] sm:$0xf0]  ;;  %v3138_v38 = vor.u32 %v3841_v32, %v3137_v31  ;;  %1591 = vmatpush.bf16.msra.mxu1 %v2882_v33  ;;  %v3751_v32 = vld [vmem:[#allocation5 + $0xe4] sm:$0xf]  ;;  %p4255_p0 = pnand %p4254_p13, %p4250_p11 }
  0x66   : > { %v2865_v37 = vld [vmem:[#allocation5 + $0x180] sm:$0xf]  ;;  %v3773_v39 = vld [vmem:[#allocation5 + $0x18c] sm:$0xf0]  ;;  %v2738_v44 = vor.u32 %v3741_v36, %v2737_v35  ;;  %1605 = vmatpush.bf16.msra.mxu2 %v3010_v34  ;;  %v2787_v33 = vld [vmem:[#allocation5 + $0xf0] sm:$0xf0] }
  0x67   : > { %v2993_v40 = vld [vmem:[#allocation5 + $0x280] sm:$0xf]  ;;  %v3805_v41 = vld [vmem:[#allocation5 + $0x28c] sm:$0xf0]  ;;  %v2866_v45 = vor.u32 %v3773_v39, %v2865_v37  ;;  %1619 = vmatpush.bf16.msra.mxu3 %v3138_v38  ;;  %v373_v36 = vld [vmem:[%s4496_s13 + $0x48] sm:$0xff] }
  0x68   : > { %v3121_v42 = vld [vmem:[#allocation5 + $0x380] sm:$0xf]  ;;  %v3837_v43 = vld [vmem:[#allocation5 + $0x38c] sm:$0xf0]  ;;  %v2994_v46 = vor.u32 %v3805_v41, %v2993_v40  ;;  %1578 = vmatpush.bf16.msra.mxu0 %v2738_v44  ;;  %v3783_v41 = vld [vmem:[#allocation5 + $0x1e4] sm:$0xf] }
  0x69   : > { %v2721_v47 = vld [vmem:[#allocation5 + $0x60] sm:$0xf]  ;;  %v3737_v48 = vld [vmem:[#allocation5 + $0x6c] sm:$0xf0]  ;;  %v3122_v50 = vor.u32 %v3837_v43, %v3121_v42  ;;  %1592 = vmatpush.bf16.msra.mxu1 %v2866_v45  ;;  %v371_v43 = vld [vmem:[%s4496_s13 + $0x38] sm:$0xff] }
  0x6a   : > { %v2849_v49 = vld [vmem:[#allocation5 + $0x160] sm:$0xf]  ;;  %v3769_v51 = vld [vmem:[#allocation5 + $0x16c] sm:$0xf0]  ;;  %v2722_v56 = vor.u32 %v3737_v48, %v2721_v47  ;;  %1606 = vmatpush.bf16.msra.mxu2 %v2994_v46  ;;  %v2915_v46 = vld [vmem:[#allocation5 + $0x1f0] sm:$0xf0] }
  0x6b   : > { %v2977_v52 = vld [vmem:[#allocation5 + $0x260] sm:$0xf]  ;;  %v3801_v53 = vld [vmem:[#allocation5 + $0x26c] sm:$0xf0]  ;;  %v2850_v57 = vor.u32 %v3769_v51, %v2849_v49  ;;  %1620 = vmatpush.bf16.msra.mxu3 %v3122_v50  ;;  %v367_v47 = vld [vmem:[%s4496_s13 + $0x18] sm:$0xff]  ;;  %v2790_v50 = vor.u32 %v3751_v32, %v2787_v33 }
  0x6c   : > { %v3105_v54 = vld [vmem:[#allocation5 + $0x360] sm:$0xf]  ;;  %v3833_v55 = vld [vmem:[#allocation5 + $0x36c] sm:$0xf0]  ;;  %v2978_v58 = vor.u32 %v3801_v53, %v2977_v52  ;;  %1579 = vmatpush.bf16.msra.mxu0 %v2722_v56 }
  0x6d   : > { %v2705_v59 = vld [vmem:[#allocation5 + $0x40] sm:$0xf]  ;;  %v3733_v60 = vld [vmem:[#allocation5 + $0x4c] sm:$0xf0]  ;;  %v3106_v62 = vor.u32 %v3833_v55, %v3105_v54  ;;  %1593 = vmatpush.bf16.msra.mxu1 %v2850_v57  ;;  %v3747_v57 = vld [vmem:[#allocation5 + $0xc4] sm:$0xf] }
  0x6e   : > { %v2833_v61 = vld [vmem:[#allocation5 + $0x140] sm:$0xf]  ;;  %v3765_v63 = vld [vmem:[#allocation5 + $0x14c] sm:$0xf0]  ;;  %v2706_v4 = vor.u32 %v3733_v60, %v2705_v59  ;;  %1607 = vmatpush.bf16.msra.mxu2 %v2978_v58  ;;  %v2771_v58 = vld [vmem:[#allocation5 + $0xd0] sm:$0xf0] }
  0x6f   : > { %v2961_v0 = vld [vmem:[#allocation5 + $0x240] sm:$0xf]  ;;  %v3797_v1 = vld [vmem:[#allocation5 + $0x24c] sm:$0xf0]  ;;  %v2834_v6 = vor.u32 %v3765_v63, %v2833_v61  ;;  %1621 = vmatpush.bf16.msra.mxu3 %v3106_v62  ;;  %v365_v61 = vld [vmem:[%s4496_s13 + $0x8] sm:$0xff]  ;;  %v2918_v63 = vor.u32 %v3783_v41, %v2915_v46 }
  0x70   : > { %v3089_v2 = vld [vmem:[#allocation5 + $0x340] sm:$0xf]  ;;  %v3829_v3 = vld [vmem:[#allocation5 + $0x34c] sm:$0xf0]  ;;  %v2962_v7 = vor.u32 %v3797_v1, %v2961_v0  ;;  %1580 = vmatpush.bf16.msra.mxu0 %v2706_v4  ;;  %v3779_v1 = vld [vmem:[#allocation5 + $0x1c4] sm:$0xf]  ;;  %v2774_v4 = vor.u32 %v3747_v57, %v2771_v58 }
  0x71   : > { %v2689_v5 = vld [vmem:[#allocation5 + $0x20] sm:$0xf]  ;;  %v3729_v8 = vld [vmem:[#allocation5 + $0x2c] sm:$0xf0]  ;;  %v3090_v11 = vor.u32 %v3829_v3, %v3089_v2  ;;  %1594 = vmatpush.bf16.msra.mxu1 %v2834_v6  ;;  %v2899_v2 = vld [vmem:[#allocation5 + $0x1d0] sm:$0xf0] }
  0x72   : > { %v2817_v9 = vld [vmem:[#allocation5 + $0x120] sm:$0xf]  ;;  %v3761_v10 = vld [vmem:[#allocation5 + $0x12c] sm:$0xf0]  ;;  %v2690_v18 = vor.u32 %v3729_v8, %v2689_v5  ;;  %1608 = vmatpush.bf16.msra.mxu2 %v2962_v7  ;;  %v2851_v41 = vld [vmem:[#allocation5 + $0x170] sm:$0xf0] }
  0x73   : > { %v2945_v12 = vld [vmem:[#allocation5 + $0x220] sm:$0xf]  ;;  %v3793_v13 = vld [vmem:[#allocation5 + $0x22c] sm:$0xf0]  ;;  %v2818_v23 = vor.u32 %v3761_v10, %v2817_v9  ;;  %1622 = vmatpush.bf16.msra.mxu3 %v3090_v11  ;;  %v3743_v10 = vld [vmem:[#allocation5 + $0xa4] sm:$0xf] }
  0x74   : > { %v3073_v14 = vld [vmem:[#allocation5 + $0x320] sm:$0xf]  ;;  %v3825_v15 = vld [vmem:[#allocation5 + $0x32c] sm:$0xf0]  ;;  %v2946_v24 = vor.u32 %v3793_v13, %v2945_v12  ;;  %1581 = vmatpush.bf16.msra.mxu0 %v2690_v18  ;;  %v2755_v11 = vld [vmem:[#allocation5 + $0xb0] sm:$0xf0]  ;;  %v2902_v12 = vor.u32 %v3779_v1, %v2899_v2 }
  0x75   : > { %v2673_v16 = vld [vmem:[#allocation5] sm:$0xf]  ;;  %v3725_v17 = vld [vmem:[#allocation5 + $0xc] sm:$0xf0]  ;;  %v3074_v28 = vor.u32 %v3825_v15, %v3073_v14  ;;  %1595 = vmatpush.bf16.msra.mxu1 %v2818_v23  ;;  %v3775_v14 = vld [vmem:[#allocation5 + $0x1a4] sm:$0xf] }
  0x76   : > { %v2801_v19 = vld [vmem:[#allocation5 + $0x100] sm:$0xf]  ;;  %v3757_v20 = vld [vmem:[#allocation5 + $0x10c] sm:$0xf0]  ;;  %v2674_v35 = vor.u32 %v3725_v17, %v2673_v16  ;;  %1609 = vmatpush.bf16.msra.mxu2 %v2946_v24  ;;  %v2883_v15 = vld [vmem:[#allocation5 + $0x1b0] sm:$0xf0]  ;;  %v2758_v17 = vor.u32 %v3743_v10, %v2755_v11 }
  0x77   : > { %v2929_v21 = vld [vmem:[#allocation5 + $0x200] sm:$0xf]  ;;  %v3789_v22 = vld [vmem:[#allocation5 + $0x20c] sm:$0xf0]  ;;  %v2802_v39 = vor.u32 %v3757_v20, %v2801_v19  ;;  %1623 = vmatpush.bf16.msra.mxu3 %v3074_v28  ;;  %v2739_v23 = vld [vmem:[#allocation5 + $0x90] sm:$0xf0]  ;;  %v2886_v24 = vor.u32 %v3775_v14, %v2883_v15 }
  0x78   : > { %v3057_v25 = vld [vmem:[#allocation5 + $0x300] sm:$0xf]  ;;  %v3821_v26 = vld [vmem:[#allocation5 + $0x30c] sm:$0xf0]  ;;  %v2930_v40 = vor.u32 %v3789_v22, %v2929_v21  ;;  %1582 = vmatpush.bf16.msra.mxu0 %v2674_v35  ;;  %v3739_v22 = vld [vmem:[#allocation5 + $0x84] sm:$0xf] }
  0x79   : > { %v3297_v27 = vld [vmem:[#allocation5 + $0x4e0] sm:$0xf]  ;;  %v3881_v29 = vld [vmem:[#allocation5 + $0x4ec] sm:$0xf0]  ;;  %v3058_v44 = vor.u32 %v3821_v26, %v3057_v25  ;;  %1596 = vmatpush.bf16.msra.mxu1 %v2802_v39  ;;  %v3771_v26 = vld [vmem:[#allocation5 + $0x184] sm:$0xf] }
  0x7a   : > { %v3425_v30 = vld [vmem:[#allocation5 + $0x5e0] sm:$0xf]  ;;  %v3913_v31 = vld [vmem:[#allocation5 + $0x5ec] sm:$0xf0]  ;;  %v3298_v45 = vor.u32 %v3881_v29, %v3297_v27  ;;  %1610 = vmatpush.bf16.msra.mxu2 %v2930_v40  ;;  %v2867_v27 = vld [vmem:[#allocation5 + $0x190] sm:$0xf0]  ;;  %v2742_v29 = vor.u32 %v3739_v22, %v2739_v23 }
  0x7b   : > { %v366_v34 = vld [vmem:[%s4496_s13 + $0x10] sm:$0xff]  ;;  %v364_v42 = vld [vmem:[%s4496_s13] sm:$0xff]  ;;  %v3426_v49 = vor.u32 %v3913_v31, %v3425_v30  ;;  %1624 = vmatpush.bf16.msra.mxu3 %v3058_v44 }
  0x7c   : > { %v3441_v37 = vld [vmem:[#allocation5 + $0x600] sm:$0xf]  ;;  %v3917_v38 = vld [vmem:[#allocation5 + $0x60c] sm:$0xf0]  ;;  %v4525_v54 = vpack.c.bf16 %v373_v36, %v366_v34  ;;  %v4527_v55 = vpack.c.bf16 %v371_v43, %v364_v42  ;;  %1631 = vmatpush.bf16.msrb.mxu0 %v3298_v45  ;;  %v3735_v34 = vld [vmem:[#allocation5 + $0x64] sm:$0xf] }
  0x7d   : > { %v374_v48 = vld [vmem:[%s4496_s13 + $0x50] sm:$0xff]  ;;  %v3442_v59 = vor.u32 %v3917_v38, %v3441_v37  ;;  %v372_v62 = vld [vmem:[%s4496_s13 + $0x40] sm:$0xff]  ;;  %1645 = vmatpush.bf16.msrb.mxu1 %v3426_v49  ;;  %v377_v37 = vld [vmem:[%s4496_s13 + $0x68] sm:$0xff]  ;;  %v2870_v38 = vor.u32 %v3771_v26, %v2867_v27 }
  0x7e   : > { %v3281_v51 = vld [vmem:[#allocation5 + $0x4c0] sm:$0xf]  ;;  %v3877_v52 = vld [vmem:[#allocation5 + $0x4cc] sm:$0xf0]  ;;  %v4529_v60 = vpack.c.bf16 %v374_v48, %v367_v47  ;;  %1611 = vmatmul.bf16.vlgmr.msra.gmra.mxu2 %v4525_v54  ;;  %1583 = vmatmul.bf16.vlgmr.msra.gmra.mxu0 %v4527_v55  ;;  %v4535_v8 = vpack.c.bf16 %v372_v62, %v365_v61  ;;  %v2723_v35 = vld [vmem:[#allocation5 + $0x70] sm:$0xf0] }
  0x7f   : > { %v3409_v53 = vld [vmem:[#allocation5 + $0x5c0] sm:$0xf]  ;;  %v3909_v56 = vld [vmem:[#allocation5 + $0x5cc] sm:$0xf0]  ;;  %v3282_v0 = vor.u32 %v3877_v52, %v3281_v51  ;;  %1673 = vmatpush.bf16.msrb.mxu3 %v2790_v50  ;;  %1666 = vmatpush.bf16.msrb.mxu2 %v3442_v59  ;;  %v3767_v40 = vld [vmem:[#allocation5 + $0x164] sm:$0xf]  ;;  %v2726_v43 = vor.u32 %v3735_v34, %v2723_v35 }
  0x80   : > { %v3410_v3 = vor.u32 %v3909_v56, %v3409_v53  ;;  %v3265_v5 = vld [vmem:[#allocation5 + $0x4a0] sm:$0xf]  ;;  %v3873_v6 = vld [vmem:[#allocation5 + $0x4ac] sm:$0xf0]  ;;  %1625 = vmatmul.bf16.vlgmr.msra.gmra.mxu3 %v4529_v60  ;;  %1597 = vmatmul.bf16.vlgmr.msra.gmra.mxu1 %v4535_v8  ;;  %v3731_v48 = vld [vmem:[#allocation5 + $0x44] sm:$0xf]  ;;  %v2854_v51 = vor.u32 %v3767_v40, %v2851_v41 }
  0x81   : > { %v3393_v7 = vld [vmem:[#allocation5 + $0x5a0] sm:$0xf]  ;;  %v3905_v9 = vld [vmem:[#allocation5 + $0x5ac] sm:$0xf0]  ;;  %1632 = vmatpush.bf16.msrb.mxu0 %v3282_v0  ;;  %v3266_v13 = vor.u32 %v3873_v6, %v3265_v5  ;;  %v2707_v49 = vld [vmem:[#allocation5 + $0x50] sm:$0xf0] }
  0x82   : > { %1646 = vmatpush.bf16.msrb.mxu1 %v3410_v3  ;;  %v3394_v16 = vor.u32 %v3905_v9, %v3393_v7  ;;  %v3249_v18 = vld [vmem:[#allocation5 + $0x480] sm:$0xf]  ;;  %v3869_v19 = vld [vmem:[#allocation5 + $0x48c] sm:$0xf0]  ;;  %v3763_v53 = vld [vmem:[#allocation5 + $0x144] sm:$0xf]  ;;  %v2710_v58 = vor.u32 %v3731_v48, %v2707_v49 }
  0x83   : > { %1687 = vmatpush.bf16.msra.mxu2 %v2918_v63  ;;  %1674 = vmatpush.bf16.msrb.mxu3 %v2774_v4  ;;  %v3377_v20 = vld [vmem:[#allocation5 + $0x580] sm:$0xf]  ;;  %v3901_v21 = vld [vmem:[#allocation5 + $0x58c] sm:$0xf0]  ;;  %v3250_v25 = vor.u32 %v3869_v19, %v3249_v18  ;;  %v2835_v56 = vld [vmem:[#allocation5 + $0x150] sm:$0xf0] }
  0x84   : > { %v3378_v28 = vor.u32 %v3901_v21, %v3377_v20  ;;  %v3233_v30 = vld [vmem:[#allocation5 + $0x460] sm:$0xf]  ;;  %v3865_v31 = vld [vmem:[#allocation5 + $0x46c] sm:$0xf0]  ;;  %v3727_v0 = vld [vmem:[#allocation5 + $0x24] sm:$0xf]  ;;  %v2838_v4 = vor.u32 %v3763_v53, %v2835_v56 }
  0x85   : > { %1633 = vmatpush.bf16.msrb.mxu0 %v3266_v13  ;;  %v3361_v32 = vld [vmem:[#allocation5 + $0x560] sm:$0xf]  ;;  %v3897_v33 = vld [vmem:[#allocation5 + $0x56c] sm:$0xf0]  ;;  %v3234_v39 = vor.u32 %v3865_v31, %v3233_v30  ;;  %v2691_v1 = vld [vmem:[#allocation5 + $0x30] sm:$0xf0] }
  0x86   : > { %1647 = vmatpush.bf16.msrb.mxu1 %v3394_v16  ;;  %v370_v36 = vld [vmem:[%s4496_s13 + $0x30] sm:$0xff]  ;;  %v3362_v42 = vor.u32 %v3897_v33, %v3361_v32  ;;  %v2694_v11 = vor.u32 %v3727_v0, %v2691_v1  ;;  %v368_v23 = vld [vmem:[%s4496_s13 + $0x20] sm:$0xff] }
  0x87   : > { %1688 = vmatpush.bf16.msra.mxu2 %v2902_v12  ;;  %1675 = vmatpush.bf16.msrb.mxu3 %v2758_v17  ;;  %v3217_v44 = vld [vmem:[#allocation5 + $0x440] sm:$0xf]  ;;  %v3861_v45 = vld [vmem:[#allocation5 + $0x44c] sm:$0xf0]  ;;  %v4541_v50 = vpack.c.bf16 %v377_v37, %v370_v36  ;;  %v3759_v2 = vld [vmem:[#allocation5 + $0x124] sm:$0xf] }
  0x88   : > { %v3345_v46 = vld [vmem:[#allocation5 + $0x540] sm:$0xf]  ;;  %v3893_v47 = vld [vmem:[#allocation5 + $0x54c] sm:$0xf0]  ;;  %v3218_v52 = vor.u32 %v3861_v45, %v3217_v44  ;;  %v2819_v3 = vld [vmem:[#allocation5 + $0x130] sm:$0xf0] }
  0x89   : > { %1634 = vmatpush.bf16.msrb.mxu0 %v3250_v25  ;;  %v3346_v57 = vor.u32 %v3893_v47, %v3345_v46  ;;  %v3201_v59 = vld [vmem:[#allocation5 + $0x420] sm:$0xf]  ;;  %v3857_v61 = vld [vmem:[#allocation5 + $0x42c] sm:$0xf0]  ;;  %v3723_v13 = vld [vmem:[#allocation5 + $0x4] sm:$0xf]  ;;  %v2822_v21 = vor.u32 %v3759_v2, %v2819_v3 }
  0x8a   : > { %1648 = vmatpush.bf16.msrb.mxu1 %v3378_v28  ;;  %v3329_v62 = vld [vmem:[#allocation5 + $0x520] sm:$0xf]  ;;  %v3889_v63 = vld [vmem:[#allocation5 + $0x52c] sm:$0xf0]  ;;  %v3202_v5 = vor.u32 %v3857_v61, %v3201_v59  ;;  %v2675_v14 = vld [vmem:[#allocation5 + $0x10] sm:$0xf0] }
  0x8b   : > { %1689 = vmatpush.bf16.msra.mxu2 %v2886_v24  ;;  %1676 = vmatpush.bf16.msrb.mxu3 %v2742_v29  ;;  %v3185_v6 = vld [vmem:[#allocation5 + $0x400] sm:$0xf]  ;;  %v3853_v7 = vld [vmem:[#allocation5 + $0x40c] sm:$0xf0]  ;;  %v3330_v10 = vor.u32 %v3889_v63, %v3329_v62  ;;  %v3815_v15 = vld [vmem:[#allocation5 + $0x2e4] sm:$0xf]  ;;  %v2678_v27 = vor.u32 %v3723_v13, %v2675_v14 }
  0x8c   : > { %v3313_v9 = vld [vmem:[#allocation5 + $0x500] sm:$0xf]  ;;  %v3885_v12 = vld [vmem:[#allocation5 + $0x50c] sm:$0xf0]  ;;  %v3043_v16 = vld [vmem:[#allocation5 + $0x2f0] sm:$0xf0]  ;;  %v3186_v22 = vor.u32 %v3853_v7, %v3185_v6 }
  0x8d   : > { %1635 = vmatpush.bf16.msrb.mxu0 %v3234_v39  ;;  %v3847_v17 = vld [vmem:[#allocation5 + $0x3e4] sm:$0xf]  ;;  %v3171_v18 = vld [vmem:[#allocation5 + $0x3f0] sm:$0xf0]  ;;  %v375_v24 = vld [vmem:[%s4496_s13 + $0x58] sm:$0xff]  ;;  %v3314_v26 = vor.u32 %v3885_v12, %v3313_v9  ;;  %v3046_v31 = vor.u32 %v3815_v15, %v3043_v16 }
  0x8e   : > { %1649 = vmatpush.bf16.msrb.mxu1 %v3362_v42  ;;  %3455 = vmatmul.msk.bf16.vlgmr.msrb.gmra.mxu2 %vm1571_vm0, %v4541_v50  ;;  %v3879_v19 = vld [vmem:[#allocation5 + $0x4e4] sm:$0xf]  ;;  %v3299_v20 = vld [vmem:[#allocation5 + $0x4f0] sm:$0xf0]  ;;  %v369_v29 = vld [vmem:[%s4496_s13 + $0x28] sm:$0xff]  ;;  %v3174_v32 = vor.u32 %v3847_v17, %v3171_v18  ;;  %v4549_v37 = vpack.c.bf16 %v375_v24, %v368_v23 }
  0x8f   : > { %1690 = vmatpush.bf16.msra.mxu2 %v2870_v38  ;;  %1677 = vmatpush.bf16.msrb.mxu3 %v2726_v43  ;;  %v3755_v25 = vld [vmem:[#allocation5 + $0x104] sm:$0xf]  ;;  %v2803_v28 = vld [vmem:[#allocation5 + $0x110] sm:$0xf0]  ;;  %v3302_v36 = vor.u32 %v3879_v19, %v3299_v20 }
  0x90   : > { %v376_v30 = vld [vmem:[%s4496_s13 + $0x60] sm:$0xff]  ;;  %v2806_v41 = vor.u32 %v3755_v25, %v2803_v28 }
  0x91   : > { %1636 = vmatpush.bf16.msrb.mxu0 %v3218_v52  ;;  %v3911_v33 = vld [vmem:[#allocation5 + $0x5e4] sm:$0xf]  ;;  %v3427_v34 = vld [vmem:[#allocation5 + $0x5f0] sm:$0xf0]  ;;  %v4551_v42 = vpack.c.bf16 %v376_v30, %v369_v29 }
  0x92   : > { %1650 = vmatpush.bf16.msrb.mxu1 %v3346_v57  ;;  %v3811_v35 = vld [vmem:[#allocation5 + $0x2c4] sm:$0xf]  ;;  %v3027_v38 = vld [vmem:[#allocation5 + $0x2d0] sm:$0xf0]  ;;  %v3430_v45 = vor.u32 %v3911_v33, %v3427_v34 }
  0x93   : > { %1691 = vmatpush.bf16.msra.mxu2 %v2854_v51  ;;  %1678 = vmatpush.bf16.msrb.mxu3 %v2710_v58  ;;  %v3843_v39 = vld [vmem:[#allocation5 + $0x3c4] sm:$0xf]  ;;  %v3155_v40 = vld [vmem:[#allocation5 + $0x3d0] sm:$0xf0]  ;;  %v3030_v46 = vor.u32 %v3811_v35, %v3027_v38 }
  0x94   : > { %v3875_v43 = vld [vmem:[#allocation5 + $0x4c4] sm:$0xf]  ;;  %v3283_v44 = vld [vmem:[#allocation5 + $0x4d0] sm:$0xf0]  ;;  %v3158_v47 = vor.u32 %v3843_v39, %v3155_v40 }
  0x95   : > { %1637 = vmatpush.bf16.msrb.mxu0 %v3202_v5  ;;  %v3907_v48 = vld [vmem:[#allocation5 + $0x5c4] sm:$0xf]  ;;  %v3411_v49 = vld [vmem:[#allocation5 + $0x5d0] sm:$0xf0]  ;;  %v3286_v52 = vor.u32 %v3875_v43, %v3283_v44 }
  0x96   : > { %1651 = vmatpush.bf16.msrb.mxu1 %v3330_v10  ;;  %v3807_v51 = vld [vmem:[#allocation5 + $0x2a4] sm:$0xf]  ;;  %v3011_v53 = vld [vmem:[#allocation5 + $0x2b0] sm:$0xf0]  ;;  %v3414_v61 = vor.u32 %v3907_v48, %v3411_v49 }
  0x97   : > { %1692 = vmatpush.bf16.msra.mxu2 %v2838_v4  ;;  %1679 = vmatpush.bf16.msrb.mxu3 %v2694_v11  ;;  %v3839_v56 = vld [vmem:[#allocation5 + $0x3a4] sm:$0xf]  ;;  %v3139_v57 = vld [vmem:[#allocation5 + $0x3b0] sm:$0xf0]  ;;  %v3014_v62 = vor.u32 %v3807_v51, %v3011_v53 }
  0x98   : > { %v3871_v58 = vld [vmem:[#allocation5 + $0x4a4] sm:$0xf]  ;;  %v3267_v59 = vld [vmem:[#allocation5 + $0x4b0] sm:$0xf0]  ;;  %v3142_v63 = vor.u32 %v3839_v56, %v3139_v57 }
  0x99   : > { %1638 = vmatpush.bf16.msrb.mxu0 %v3186_v22  ;;  %v3903_v0 = vld [vmem:[#allocation5 + $0x5a4] sm:$0xf]  ;;  %v3395_v1 = vld [vmem:[#allocation5 + $0x5b0] sm:$0xf0]  ;;  %v3270_v3 = vor.u32 %v3871_v58, %v3267_v59 }
  0x9a   : > { %1652 = vmatpush.bf16.msrb.mxu1 %v3314_v26  ;;  %v3803_v2 = vld [vmem:[#allocation5 + $0x284] sm:$0xf]  ;;  %v2995_v4 = vld [vmem:[#allocation5 + $0x290] sm:$0xf0]  ;;  %v3398_v10 = vor.u32 %v3903_v0, %v3395_v1  ;;  %v2793_v0 = vld [vmem:[#allocation5 + $0xe8] sm:$0xf] }
  0x9b   : > { %1693 = vmatpush.bf16.msra.mxu2 %v2822_v21  ;;  %1680 = vmatpush.bf16.msrb.mxu3 %v2678_v27  ;;  %v3835_v5 = vld [vmem:[#allocation5 + $0x384] sm:$0xf]  ;;  %v3123_v6 = vld [vmem:[#allocation5 + $0x390] sm:$0xf0]  ;;  %v2998_v11 = vor.u32 %v3803_v2, %v2995_v4  ;;  %v3754_v1 = vld [vmem:[#allocation5 + $0xf4] sm:$0xf0] }
  0x9c   : > { %1639 = vmatmul.bf16.vlgmr.msrb.gmra.mxu0 %v4549_v37  ;;  %v3867_v7 = vld [vmem:[#allocation5 + $0x484] sm:$0xf]  ;;  %v3251_v9 = vld [vmem:[#allocation5 + $0x490] sm:$0xf0]  ;;  %v3126_v12 = vor.u32 %v3835_v5, %v3123_v6  ;;  %v3049_v5 = vld [vmem:[#allocation5 + $0x2e8] sm:$0xf] }
  0x9d   : > { %1701 = vmatpush.bf16.msra.mxu0 %v3046_v31  ;;  %1653 = vmatmul.bf16.vlgmr.msrb.gmra.mxu1 %v4551_v42  ;;  %v3899_v13 = vld [vmem:[#allocation5 + $0x584] sm:$0xf]  ;;  %v3379_v14 = vld [vmem:[#allocation5 + $0x590] sm:$0xf0]  ;;  %v3254_v16 = vor.u32 %v3867_v7, %v3251_v9  ;;  %v3818_v6 = vld [vmem:[#allocation5 + $0x2f4] sm:$0xf0] }
  0x9e   : > { %1715 = vmatpush.bf16.msra.mxu1 %v3174_v32  ;;  %1681 = vmatmul.bf16.vlgmr.msrb.gmra.mxu3 %v4527_v55  ;;  %v3799_v15 = vld [vmem:[#allocation5 + $0x264] sm:$0xf]  ;;  %v2979_v17 = vld [vmem:[#allocation5 + $0x270] sm:$0xf0]  ;;  %v3382_v22 = vor.u32 %v3899_v13, %v3379_v14  ;;  %v2794_v13 = vor.u32 %v3754_v1, %v2793_v0  ;;  %v3177_v14 = vld [vmem:[#allocation5 + $0x3e8] sm:$0xf] }
  0x9f   : > { %1729 = vmatpush.bf16.msra.mxu3 %v3302_v36  ;;  %1694 = vmatpush.bf16.msra.mxu2 %v2806_v41  ;;  %v3831_v18 = vld [vmem:[#allocation5 + $0x364] sm:$0xf]  ;;  %v3107_v19 = vld [vmem:[#allocation5 + $0x370] sm:$0xf0]  ;;  %v2982_v23 = vor.u32 %v3799_v15, %v2979_v17  ;;  %v3850_v15 = vld [vmem:[#allocation5 + $0x3f4] sm:$0xf0] }
  0xa0   : > { %v3863_v20 = vld [vmem:[#allocation5 + $0x464] sm:$0xf]  ;;  %v3235_v21 = vld [vmem:[#allocation5 + $0x470] sm:$0xf0]  ;;  %v3110_v24 = vor.u32 %v3831_v18, %v3107_v19  ;;  %v2921_v17 = vld [vmem:[#allocation5 + $0x1e8] sm:$0xf]  ;;  %v3050_v19 = vor.u32 %v3818_v6, %v3049_v5 }
  0xa1   : > { %1702 = vmatpush.bf16.msra.mxu0 %v3030_v46  ;;  %v3895_v25 = vld [vmem:[#allocation5 + $0x564] sm:$0xf]  ;;  %v3363_v26 = vld [vmem:[#allocation5 + $0x570] sm:$0xf0]  ;;  %v3238_v28 = vor.u32 %v3863_v20, %v3235_v21  ;;  %v3786_v18 = vld [vmem:[#allocation5 + $0x1f4] sm:$0xf0] }
  0xa2   : > { %1716 = vmatpush.bf16.msra.mxu1 %v3158_v47  ;;  %1695 = vmatmul.bf16.vlgmr.msra.gmra.mxu2 %v4535_v8  ;;  %v3795_v27 = vld [vmem:[#allocation5 + $0x244] sm:$0xf]  ;;  %v2963_v29 = vld [vmem:[#allocation5 + $0x250] sm:$0xf0]  ;;  %v3366_v34 = vor.u32 %v3895_v25, %v3363_v26  ;;  %v2777_v21 = vld [vmem:[#allocation5 + $0xc8] sm:$0xf]  ;;  %v2922_v26 = vor.u32 %v3786_v18, %v2921_v17 }
  0xa3   : > { %1743 = vmatpush.bf16.msrb.mxu2 %v3430_v45  ;;  %1730 = vmatpush.bf16.msra.mxu3 %v3286_v52  ;;  %v3827_v30 = vld [vmem:[#allocation5 + $0x344] sm:$0xf]  ;;  %v3091_v31 = vld [vmem:[#allocation5 + $0x350] sm:$0xf0]  ;;  %v2966_v35 = vor.u32 %v3795_v27, %v2963_v29  ;;  %v3814_v25 = vld [vmem:[#allocation5 + $0x2d4] sm:$0xf0] }
  0xa4   : > { %v3859_v32 = vld [vmem:[#allocation5 + $0x444] sm:$0xf]  ;;  %v3219_v33 = vld [vmem:[#allocation5 + $0x450] sm:$0xf0]  ;;  %v3094_v36 = vor.u32 %v3827_v30, %v3091_v31  ;;  %v3161_v27 = vld [vmem:[#allocation5 + $0x3c8] sm:$0xf] }
  0xa5   : > { %1703 = vmatpush.bf16.msra.mxu0 %v3014_v62  ;;  %v3891_v38 = vld [vmem:[#allocation5 + $0x544] sm:$0xf]  ;;  %v3347_v39 = vld [vmem:[#allocation5 + $0x550] sm:$0xf0]  ;;  %v3222_v41 = vor.u32 %v3859_v32, %v3219_v33  ;;  %v2905_v30 = vld [vmem:[#allocation5 + $0x1c8] sm:$0xf] }
  0xa6   : > { %1717 = vmatpush.bf16.msra.mxu1 %v3142_v63  ;;  %v3791_v40 = vld [vmem:[#allocation5 + $0x224] sm:$0xf]  ;;  %v2947_v43 = vld [vmem:[#allocation5 + $0x230] sm:$0xf0]  ;;  %v3350_v48 = vor.u32 %v3891_v38, %v3347_v39  ;;  %v3782_v31 = vld [vmem:[#allocation5 + $0x1d4] sm:$0xf0] }
  0xa7   : > { %1744 = vmatpush.bf16.msrb.mxu2 %v3414_v61  ;;  %1731 = vmatpush.bf16.msra.mxu3 %v3270_v3  ;;  %v3823_v44 = vld [vmem:[#allocation5 + $0x324] sm:$0xf]  ;;  %v3075_v45 = vld [vmem:[#allocation5 + $0x330] sm:$0xf0]  ;;  %v2950_v52 = vor.u32 %v3791_v40, %v2947_v43  ;;  %v2761_v33 = vld [vmem:[#allocation5 + $0xa8] sm:$0xf]  ;;  %v2906_v39 = vor.u32 %v3782_v31, %v2905_v30 }
  0xa8   : > { %v3855_v46 = vld [vmem:[#allocation5 + $0x424] sm:$0xf]  ;;  %v3203_v47 = vld [vmem:[#allocation5 + $0x430] sm:$0xf0]  ;;  %v3078_v53 = vor.u32 %v3823_v44, %v3075_v45  ;;  %v3810_v38 = vld [vmem:[#allocation5 + $0x2b4] sm:$0xf0] }
  0xa9   : > { %1704 = vmatpush.bf16.msra.mxu0 %v2998_v11  ;;  %v3887_v49 = vld [vmem:[#allocation5 + $0x524] sm:$0xf]  ;;  %v3331_v51 = vld [vmem:[#allocation5 + $0x530] sm:$0xf0]  ;;  %v3206_v59 = vor.u32 %v3855_v46, %v3203_v47  ;;  %v3145_v40 = vld [vmem:[#allocation5 + $0x3a8] sm:$0xf] }
  0xaa   : > { %1718 = vmatpush.bf16.msra.mxu1 %v3126_v12  ;;  %v3787_v56 = vld [vmem:[#allocation5 + $0x204] sm:$0xf]  ;;  %v2931_v57 = vld [vmem:[#allocation5 + $0x210] sm:$0xf0]  ;;  %v3334_v3 = vor.u32 %v3887_v49, %v3331_v51  ;;  %v2889_v44 = vld [vmem:[#allocation5 + $0x1a8] sm:$0xf] }
  0xab   : > { %1745 = vmatpush.bf16.msrb.mxu2 %v3398_v10  ;;  %1732 = vmatpush.bf16.msra.mxu3 %v3254_v16  ;;  %v3819_v58 = vld [vmem:[#allocation5 + $0x304] sm:$0xf]  ;;  %v3059_v61 = vld [vmem:[#allocation5 + $0x310] sm:$0xf0]  ;;  %v2934_v7 = vor.u32 %v3787_v56, %v2931_v57  ;;  %v3778_v45 = vld [vmem:[#allocation5 + $0x1b4] sm:$0xf0] }
  0xac   : > { %v3851_v62 = vld [vmem:[#allocation5 + $0x404] sm:$0xf]  ;;  %v3187_v63 = vld [vmem:[#allocation5 + $0x410] sm:$0xf0]  ;;  %v3062_v9 = vor.u32 %v3819_v58, %v3059_v61  ;;  %v2745_v47 = vld [vmem:[#allocation5 + $0x88] sm:$0xf] }
  0xad   : > { %1705 = vmatpush.bf16.msra.mxu0 %v2982_v23  ;;  %v3915_v2 = vld [vmem:[#allocation5 + $0x604] sm:$0xf]  ;;  %v3443_v4 = vld [vmem:[#allocation5 + $0x610] sm:$0xf0]  ;;  %v3190_v12 = vor.u32 %v3851_v62, %v3187_v63  ;;  %v3178_v23 = vor.u32 %v3850_v15, %v3177_v14  ;;  %v3001_v51 = vld [vmem:[#allocation5 + $0x288] sm:$0xf] }
  0xae   : > { %1719 = vmatpush.bf16.msra.mxu1 %v3110_v24  ;;  %v3883_v10 = vld [vmem:[#allocation5 + $0x504] sm:$0xf]  ;;  %v3315_v11 = vld [vmem:[#allocation5 + $0x510] sm:$0xf0]  ;;  %v3446_v16 = vor.u32 %v3915_v2, %v3443_v4  ;;  %v3033_v24 = vld [vmem:[#allocation5 + $0x2c8] sm:$0xf] }
  0xaf   : > { %1746 = vmatpush.bf16.msrb.mxu2 %v3382_v22  ;;  %1733 = vmatpush.bf16.msra.mxu3 %v3238_v28  ;;  %v3318_v20 = vor.u32 %v3883_v10, %v3315_v11  ;;  %v3750_v22 = vld [vmem:[#allocation5 + $0xd4] sm:$0xf0]  ;;  %v3034_v32 = vor.u32 %v3814_v25, %v3033_v24  ;;  %v3129_v56 = vld [vmem:[#allocation5 + $0x388] sm:$0xf] }
  0xb0   : > { %v3846_v28 = vld [vmem:[#allocation5 + $0x3d4] sm:$0xf0]  ;;  %v2778_v29 = vor.u32 %v3750_v22, %v2777_v21  ;;  %v2729_v63 = vld [vmem:[#allocation5 + $0x68] sm:$0xf] }
  0xb1   : > { %1706 = vmatpush.bf16.msra.mxu0 %v2966_v35  ;;  %v3162_v35 = vor.u32 %v3846_v28, %v3161_v27  ;;  %v3838_v57 = vld [vmem:[#allocation5 + $0x394] sm:$0xf0]  ;;  %v2985_v2 = vld [vmem:[#allocation5 + $0x268] sm:$0xf] }
  0xb2   : > { %1720 = vmatpush.bf16.msra.mxu1 %v3094_v36  ;;  %v3017_v36 = vld [vmem:[#allocation5 + $0x2a8] sm:$0xf]  ;;  %v3774_v61 = vld [vmem:[#allocation5 + $0x194] sm:$0xf0]  ;;  %v3130_v1 = vor.u32 %v3838_v57, %v3129_v56  ;;  %v3752_v56 = vld [vmem:[#allocation5 + $0xec] sm:$0xf] }
  0xb3   : > { %1747 = vmatpush.bf16.msrb.mxu2 %v3366_v34  ;;  %1734 = vmatpush.bf16.msra.mxu3 %v3222_v41  ;;  %v3746_v34 = vld [vmem:[#allocation5 + $0xb4] sm:$0xf0]  ;;  %v3018_v46 = vor.u32 %v3810_v38, %v3017_v36  ;;  %v3113_v5 = vld [vmem:[#allocation5 + $0x368] sm:$0xf]  ;;  %v2795_v57 = vld [vmem:[#allocation5 + $0xf8] sm:$0xf0] }
  0xb4   : > { %v3842_v41 = vld [vmem:[#allocation5 + $0x3b4] sm:$0xf0]  ;;  %v2762_v43 = vor.u32 %v3746_v34, %v2761_v33  ;;  %v2969_v15 = vld [vmem:[#allocation5 + $0x248] sm:$0xf] }
  0xb5   : > { %1707 = vmatpush.bf16.msra.mxu0 %v2950_v52  ;;  %v3146_v49 = vor.u32 %v3842_v41, %v3145_v40  ;;  %v3806_v52 = vld [vmem:[#allocation5 + $0x294] sm:$0xf0]  ;;  %v3097_v18 = vld [vmem:[#allocation5 + $0x348] sm:$0xf] }
  0xb6   : > { %1721 = vmatpush.bf16.msra.mxu1 %v3078_v53  ;;  %v2890_v53 = vor.u32 %v3778_v45, %v2889_v44  ;;  %v3002_v62 = vor.u32 %v3806_v52, %v3001_v51  ;;  %v3738_v0 = vld [vmem:[#allocation5 + $0x74] sm:$0xf0]  ;;  %v2841_v21 = vld [vmem:[#allocation5 + $0x148] sm:$0xf] }
  0xb7   : > { %1748 = vmatpush.bf16.msrb.mxu2 %v3350_v48  ;;  %1735 = vmatpush.bf16.msra.mxu3 %v3206_v59  ;;  %v3742_v48 = vld [vmem:[#allocation5 + $0x94] sm:$0xf0]  ;;  %v2873_v59 = vld [vmem:[#allocation5 + $0x188] sm:$0xf] }
  0xb8   : > { %v2746_v58 = vor.u32 %v3742_v48, %v2745_v47  ;;  %v2874_v4 = vor.u32 %v3774_v61, %v2873_v59  ;;  %v3834_v6 = vld [vmem:[#allocation5 + $0x374] sm:$0xf0]  ;;  %v2697_v24 = vld [vmem:[#allocation5 + $0x28] sm:$0xf] }
  0xb9   : > { %1708 = vmatpush.bf16.msra.mxu0 %v2934_v7  ;;  %v2730_v7 = vor.u32 %v3738_v0, %v2729_v63  ;;  %v3770_v10 = vld [vmem:[#allocation5 + $0x174] sm:$0xf0]  ;;  %v3114_v14 = vor.u32 %v3834_v6, %v3113_v5  ;;  %v2953_v27 = vld [vmem:[#allocation5 + $0x228] sm:$0xf]  ;;  %v2798_v6 = vor.u32 %v3752_v56, %v2795_v57 }
  0xba   : > { %1722 = vmatpush.bf16.msra.mxu1 %v3062_v9  ;;  %v2857_v9 = vld [vmem:[#allocation5 + $0x168] sm:$0xf]  ;;  %v3766_v22 = vld [vmem:[#allocation5 + $0x154] sm:$0xf0] }
  0xbb   : > { %1749 = vmatpush.bf16.msrb.mxu2 %v3334_v3  ;;  %1736 = vmatpush.bf16.msra.mxu3 %v3190_v12  ;;  %v3802_v3 = vld [vmem:[#allocation5 + $0x274] sm:$0xf0]  ;;  %v2713_v12 = vld [vmem:[#allocation5 + $0x48] sm:$0xf]  ;;  %v2858_v17 = vor.u32 %v3770_v10, %v2857_v9  ;;  %v3748_v9 = vld [vmem:[#allocation5 + $0xcc] sm:$0xf] }
  0xbc   : > { %1709 = vmatmul.bf16.vlgmr.msra.gmra.mxu0 %v4525_v54  ;;  %v2986_v11 = vor.u32 %v3802_v3, %v2985_v2  ;;  %v3730_v25 = vld [vmem:[#allocation5 + $0x34] sm:$0xf0]  ;;  %v3081_v30 = vld [vmem:[#allocation5 + $0x328] sm:$0xf]  ;;  %v3784_v3 = vld [vmem:[#allocation5 + $0x1ec] sm:$0xf] }
  0xbd   : > { %1799 = vmatpush.bf16.msrb.mxu0 %v3050_v19  ;;  %1723 = vmatmul.bf16.vlgmr.msra.gmra.mxu1 %v4529_v60  ;;  %v3830_v19 = vld [vmem:[#allocation5 + $0x354] sm:$0xf0]  ;;  %v2825_v33 = vld [vmem:[#allocation5 + $0x128] sm:$0xf]  ;;  %v2779_v10 = vld [vmem:[#allocation5 + $0xd8] sm:$0xf0] }
  0xbe   : > { %1771 = vmatpush.bf16.msrb.mxu1 %v2794_v13  ;;  %1737 = vmatmul.bf16.vlgmr.msra.gmra.mxu3 %v4549_v37  ;;  %v3734_v13 = vld [vmem:[#allocation5 + $0x54] sm:$0xf0]  ;;  %v2937_v44 = vld [vmem:[#allocation5 + $0x208] sm:$0xf] }
  0xbf   : > { %1764 = vmatpush.bf16.msrb.mxu3 %v3446_v16  ;;  %1750 = vmatpush.bf16.msrb.mxu2 %v3318_v20  ;;  %v3798_v16 = vld [vmem:[#allocation5 + $0x254] sm:$0xf0]  ;;  %v2714_v20 = vor.u32 %v3734_v13, %v2713_v12  ;;  %v3433_v61 = vld [vmem:[#allocation5 + $0x5e8] sm:$0xf] }
  0xc0   : > { %v3794_v28 = vld [vmem:[#allocation5 + $0x234] sm:$0xf0]  ;;  %v3289_v63 = vld [vmem:[#allocation5 + $0x4c8] sm:$0xf] }
  0xc1   : > { %1800 = vmatpush.bf16.msrb.mxu0 %v3034_v32  ;;  %v3826_v31 = vld [vmem:[#allocation5 + $0x334] sm:$0xf0]  ;;  %v2698_v32 = vor.u32 %v3730_v25, %v2697_v24  ;;  %v2954_v36 = vor.u32 %v3794_v28, %v2953_v27  ;;  %v3417_v13 = vld [vmem:[#allocation5 + $0x5c8] sm:$0xf] }
  0xc2   : > { %1772 = vmatpush.bf16.msrb.mxu1 %v2778_v29  ;;  %1751 = vmatmul.bf16.vlgmr.msrb.gmra.mxu2 %v4551_v42  ;;  %v2842_v29 = vor.u32 %v3766_v22, %v2841_v21  ;;  %v3762_v34 = vld [vmem:[#allocation5 + $0x134] sm:$0xf0]  ;;  %v3082_v41 = vor.u32 %v3826_v31, %v3081_v30  ;;  %v3744_v21 = vld [vmem:[#allocation5 + $0xac] sm:$0xf]  ;;  %v2763_v22 = vld [vmem:[#allocation5 + $0xb8] sm:$0xf0] }
  0xc3   : > { %1813 = vmatpush.bf16.msra.mxu2 %v3178_v23  ;;  %1785 = vmatpush.bf16.msra.mxu3 %v2922_v26  ;;  %v2970_v23 = vor.u32 %v3798_v16, %v2969_v15  ;;  %v3098_v26 = vor.u32 %v3830_v19, %v3097_v18  ;;  %v3726_v38 = vld [vmem:[#allocation5 + $0x14] sm:$0xf0]  ;;  %v2826_v47 = vor.u32 %v3762_v34, %v2825_v33  ;;  %v3273_v15 = vld [vmem:[#allocation5 + $0x4a8] sm:$0xf]  ;;  %v2907_v18 = vld [vmem:[#allocation5 + $0x1d8] sm:$0xf0] }
  0xc4   : > { %v3882_v40 = vld [vmem:[#allocation5 + $0x4f4] sm:$0xf0]  ;;  %v2782_v19 = vor.u32 %v3748_v9, %v2779_v10  ;;  %v3401_v25 = vld [vmem:[#allocation5 + $0x5a8] sm:$0xf]  ;;  %v2891_v30 = vld [vmem:[#allocation5 + $0x1b8] sm:$0xf0]  ;;  %v2766_v31 = vor.u32 %v3744_v21, %v2763_v22 }
  0xc5   : > { %1801 = vmatpush.bf16.msrb.mxu0 %v3018_v46  ;;  %v3790_v45 = vld [vmem:[#allocation5 + $0x214] sm:$0xf0]  ;;  %v3065_v46 = vld [vmem:[#allocation5 + $0x308] sm:$0xf]  ;;  %v3740_v33 = vld [vmem:[#allocation5 + $0x8c] sm:$0xf] }
  0xc6   : > { %1773 = vmatpush.bf16.msrb.mxu1 %v2762_v43  ;;  %v2809_v43 = vld [vmem:[#allocation5 + $0x108] sm:$0xf]  ;;  %v3822_v48 = vld [vmem:[#allocation5 + $0x314] sm:$0xf0]  ;;  %v2938_v59 = vor.u32 %v3790_v45, %v2937_v44  ;;  %v2747_v34 = vld [vmem:[#allocation5 + $0x98] sm:$0xf0] }
  0xc7   : > { %1814 = vmatpush.bf16.msra.mxu2 %v3162_v35  ;;  %1786 = vmatpush.bf16.msra.mxu3 %v2906_v39  ;;  %v2681_v35 = vld [vmem:[#allocation5 + $0x8] sm:$0xf]  ;;  %v3918_v51 = vld [vmem:[#allocation5 + $0x614] sm:$0xf0]  ;;  %v3066_v0 = vor.u32 %v3822_v48, %v3065_v46  ;;  %v2875_v44 = vld [vmem:[#allocation5 + $0x198] sm:$0xf0]  ;;  %v2750_v45 = vor.u32 %v3740_v33, %v2747_v34 }
  0xc8   : > { %v3305_v39 = vld [vmem:[#allocation5 + $0x4e8] sm:$0xf]  ;;  %v2682_v52 = vor.u32 %v3726_v38, %v2681_v35  ;;  %v3874_v16 = vld [vmem:[#allocation5 + $0x4b4] sm:$0xf0]  ;;  %v2731_v48 = vld [vmem:[#allocation5 + $0x78] sm:$0xf0] }
  0xc9   : > { %1802 = vmatpush.bf16.msrb.mxu0 %v3002_v62  ;;  %v3914_v62 = vld [vmem:[#allocation5 + $0x5f4] sm:$0xf0]  ;;  %v3257_v27 = vld [vmem:[#allocation5 + $0x488] sm:$0xf]  ;;  %v2843_v9 = vld [vmem:[#allocation5 + $0x158] sm:$0xf0] }
  0xca   : > { %1774 = vmatpush.bf16.msrb.mxu1 %v2746_v58  ;;  %v3306_v58 = vor.u32 %v3882_v40, %v3305_v39  ;;  %v3870_v28 = vld [vmem:[#allocation5 + $0x494] sm:$0xf0]  ;;  %v3385_v38 = vld [vmem:[#allocation5 + $0x588] sm:$0xf]  ;;  %v2827_v21 = vld [vmem:[#allocation5 + $0x138] sm:$0xf0] }
  0xcb   : > { %1815 = vmatpush.bf16.msra.mxu2 %v3146_v49  ;;  %1787 = vmatpush.bf16.msra.mxu3 %v2890_v53  ;;  %v3449_v49 = vld [vmem:[#allocation5 + $0x608] sm:$0xf]  ;;  %v3758_v53 = vld [vmem:[#allocation5 + $0x114] sm:$0xf0]  ;;  %v3258_v35 = vor.u32 %v3870_v28, %v3257_v27  ;;  %v3724_v27 = vld [vmem:[#allocation5 + $0xc] sm:$0xf] }
  0xcc   : > { %v3450_v2 = vor.u32 %v3918_v51, %v3449_v49  ;;  %v2810_v5 = vor.u32 %v3758_v53, %v2809_v43  ;;  %v3902_v39 = vld [vmem:[#allocation5 + $0x594] sm:$0xf0]  ;;  %v3241_v40 = vld [vmem:[#allocation5 + $0x468] sm:$0xf]  ;;  %v3772_v43 = vld [vmem:[#allocation5 + $0x18c] sm:$0xf] }
  0xcd   : > { %1803 = vmatpush.bf16.msrb.mxu0 %v2986_v11  ;;  %v3386_v46 = vor.u32 %v3902_v39, %v3385_v38  ;;  %v2878_v51 = vor.u32 %v3772_v43, %v2875_v44  ;;  %v3898_v53 = vld [vmem:[#allocation5 + $0x574] sm:$0xf0]  ;;  %v3225_v56 = vld [vmem:[#allocation5 + $0x448] sm:$0xf]  ;;  %v2683_v28 = vld [vmem:[#allocation5 + $0x18] sm:$0xf0] }
  0xce   : > { %1775 = vmatpush.bf16.msrb.mxu1 %v2730_v7  ;;  %3456 = vmatmul.msk.bf16.vlgmr.msrb.gmra.mxu3 %vm1571_vm0, %v4541_v50  ;;  %v3434_v7 = vor.u32 %v3914_v62, %v3433_v61  ;;  %v3862_v57 = vld [vmem:[#allocation5 + $0x454] sm:$0xf0]  ;;  %v3179_v33 = vld [vmem:[#allocation5 + $0x3f8] sm:$0xf0]  ;;  %v3812_v38 = vld [vmem:[#allocation5 + $0x2cc] sm:$0xf]  ;;  %v2686_v39 = vor.u32 %v3724_v27, %v2683_v28 }
  0xcf   : > { %1816 = vmatpush.bf16.msra.mxu2 %v3130_v1  ;;  %1788 = vmatpush.bf16.msra.mxu3 %v2874_v4  ;;  %v3878_v1 = vld [vmem:[#allocation5 + $0x4d4] sm:$0xf0]  ;;  %v2923_v4 = vld [vmem:[#allocation5 + $0x1f8] sm:$0xf0] }
  0xd0   : > { %v3290_v11 = vor.u32 %v3878_v1, %v3289_v63  ;;  %v2926_v12 = vor.u32 %v3784_v3, %v2923_v4  ;;  %v3732_v63 = vld [vmem:[#allocation5 + $0x4c] sm:$0xf]  ;;  %v3226_v1 = vor.u32 %v3862_v57, %v3225_v56  ;;  %v3353_v3 = vld [vmem:[#allocation5 + $0x548] sm:$0xf]  ;;  %v3894_v4 = vld [vmem:[#allocation5 + $0x554] sm:$0xf0] }
  0xd1   : > { %1804 = vmatpush.bf16.msrb.mxu0 %v2970_v23  ;;  %v3274_v23 = vor.u32 %v3874_v16, %v3273_v15  ;;  %v3337_v16 = vld [vmem:[#allocation5 + $0x528] sm:$0xf]  ;;  %v2811_v43 = vld [vmem:[#allocation5 + $0x118] sm:$0xf0]  ;;  %v3876_v56 = vld [vmem:[#allocation5 + $0x4cc] sm:$0xf] }
  0xd2   : > { %1776 = vmatpush.bf16.msrb.mxu1 %v2714_v20  ;;  %v3291_v57 = vld [vmem:[#allocation5 + $0x4d8] sm:$0xf0] }
  0xd3   : > { %1817 = vmatpush.bf16.msra.mxu2 %v3114_v14  ;;  %1789 = vmatpush.bf16.msra.mxu3 %v2858_v17  ;;  %v3910_v14 = vld [vmem:[#allocation5 + $0x5d4] sm:$0xf0]  ;;  %v3780_v17 = vld [vmem:[#allocation5 + $0x1cc] sm:$0xf]  ;;  %v3115_v28 = vld [vmem:[#allocation5 + $0x378] sm:$0xf0] }
  0xd4   : > { %v3418_v20 = vor.u32 %v3910_v14, %v3417_v13  ;;  %v2910_v24 = vor.u32 %v3780_v17, %v2907_v18  ;;  %v2699_v13 = vld [vmem:[#allocation5 + $0x38] sm:$0xf0]  ;;  %v3890_v17 = vld [vmem:[#allocation5 + $0x534] sm:$0xf0]  ;;  %v3193_v18 = vld [vmem:[#allocation5 + $0x408] sm:$0xf] }
  0xd5   : > { %1805 = vmatpush.bf16.msrb.mxu0 %v2954_v36 }
  0xd6   : > { %1777 = vmatpush.bf16.msrb.mxu1 %v2698_v32 }
  0xd7   : > { %1818 = vmatpush.bf16.msra.mxu2 %v3098_v26  ;;  %1790 = vmatpush.bf16.msra.mxu3 %v2842_v29  ;;  %v3906_v26 = vld [vmem:[#allocation5 + $0x5b4] sm:$0xf0]  ;;  %v3776_v29 = vld [vmem:[#allocation5 + $0x1ac] sm:$0xf] }
  0xd8   : > { %v3402_v32 = vor.u32 %v3906_v26, %v3401_v25  ;;  %v2894_v36 = vor.u32 %v3776_v29, %v2891_v30  ;;  %v3338_v25 = vor.u32 %v3890_v17, %v3337_v16  ;;  %v3321_v26 = vld [vmem:[#allocation5 + $0x508] sm:$0xf]  ;;  %v3131_v17 = vld [vmem:[#allocation5 + $0x398] sm:$0xf0] }
  0xd9   : > { %1806 = vmatpush.bf16.msrb.mxu0 %v2938_v59  ;;  %v2859_v59 = vld [vmem:[#allocation5 + $0x178] sm:$0xf0] }
  0xda   : > { %1778 = vmatpush.bf16.msrb.mxu1 %v2682_v52  ;;  %v3369_v52 = vld [vmem:[#allocation5 + $0x568] sm:$0xf] }
  0xdb   : > { %1819 = vmatpush.bf16.msra.mxu2 %v3082_v41  ;;  %1791 = vmatpush.bf16.msra.mxu3 %v2826_v47  ;;  %v3866_v41 = vld [vmem:[#allocation5 + $0x474] sm:$0xf0]  ;;  %v3736_v47 = vld [vmem:[#allocation5 + $0x6c] sm:$0xf]  ;;  %v3370_v62 = vor.u32 %v3898_v53, %v3369_v52  ;;  %v3163_v53 = vld [vmem:[#allocation5 + $0x3d8] sm:$0xf0] }
  0xdc   : > { %1807 = vmatmul.bf16.vlgmr.msrb.gmra.mxu0 %v4525_v54  ;;  %v3242_v49 = vor.u32 %v3866_v41, %v3241_v40  ;;  %v2734_v61 = vor.u32 %v3736_v47, %v2731_v48  ;;  %v3035_v40 = vld [vmem:[#allocation5 + $0x2d8] sm:$0xf0]  ;;  %v3756_v41 = vld [vmem:[#allocation5 + $0x10c] sm:$0xf] }
  0xdd   : > { %1862 = vmatpush.bf16.msra.mxu0 %v3450_v2  ;;  %1779 = vmatmul.bf16.vlgmr.msrb.gmra.mxu1 %v4527_v55  ;;  %v2814_v52 = vor.u32 %v3756_v41, %v2811_v43  ;;  %v3860_v41 = vld [vmem:[#allocation5 + $0x44c] sm:$0xf]  ;;  %v3227_v43 = vld [vmem:[#allocation5 + $0x458] sm:$0xf0] }
  0xde   : > { %1827 = vmatpush.bf16.msra.mxu1 %v3306_v58  ;;  %v3768_v58 = vld [vmem:[#allocation5 + $0x16c] sm:$0xf] }
  0xdf   : > { %1820 = vmatpush.bf16.msra.mxu2 %v3066_v0  ;;  %1792 = vmatpush.bf16.msra.mxu3 %v2810_v5  ;;  %v2715_v0 = vld [vmem:[#allocation5 + $0x58] sm:$0xf0]  ;;  %v2862_v2 = vor.u32 %v3768_v58, %v2859_v59  ;;  %v3209_v5 = vld [vmem:[#allocation5 + $0x428] sm:$0xf]  ;;  %v3808_v59 = vld [vmem:[#allocation5 + $0x2ac] sm:$0xf] }
  0xe0   : > { %v2718_v10 = vor.u32 %v3732_v63, %v2715_v0  ;;  %v3419_v63 = vld [vmem:[#allocation5 + $0x5d8] sm:$0xf0] }
  0xe1   : > { %1883 = vmatpush.bf16.msrb.mxu0 %v2926_v12  ;;  %v3728_v12 = vld [vmem:[#allocation5 + $0x2c] sm:$0xf] }
  0xe2   : > { %1828 = vmatpush.bf16.msra.mxu1 %v3290_v11  ;;  %1793 = vmatmul.bf16.vlgmr.msra.gmra.mxu3 %v4535_v8  ;;  %v3354_v11 = vor.u32 %v3894_v4, %v3353_v3  ;;  %v2702_v22 = vor.u32 %v3728_v12, %v2699_v13  ;;  %v3147_v4 = vld [vmem:[#allocation5 + $0x3b8] sm:$0xf0] }
  0xe3   : > { %1869 = vmatpush.bf16.msrb.mxu2 %v2798_v6  ;;  %1841 = vmatpush.bf16.msrb.mxu3 %v3434_v7  ;;  %v3858_v6 = vld [vmem:[#allocation5 + $0x434] sm:$0xf0]  ;;  %v3764_v7 = vld [vmem:[#allocation5 + $0x14c] sm:$0xf]  ;;  %v3403_v12 = vld [vmem:[#allocation5 + $0x5b8] sm:$0xf0] }
  0xe4   : > { %1821 = vmatmul.bf16.vlgmr.msra.gmra.mxu2 %v4529_v60  ;;  %v3210_v14 = vor.u32 %v3858_v6, %v3209_v5  ;;  %v2846_v15 = vor.u32 %v3764_v7, %v2843_v9  ;;  %v3872_v5 = vld [vmem:[#allocation5 + $0x4ac] sm:$0xf]  ;;  %v3275_v6 = vld [vmem:[#allocation5 + $0x4b8] sm:$0xf0] }
  0xe5   : > { %1884 = vmatpush.bf16.msrb.mxu0 %v2910_v24  ;;  %v3051_v24 = vld [vmem:[#allocation5 + $0x2f8] sm:$0xf0]  ;;  %v3804_v9 = vld [vmem:[#allocation5 + $0x28c] sm:$0xf] }
  0xe6   : > { %1829 = vmatpush.bf16.msra.mxu1 %v3274_v23  ;;  %v3816_v23 = vld [vmem:[#allocation5 + $0x2ec] sm:$0xf] }
  0xe7   : > { %1870 = vmatpush.bf16.msrb.mxu2 %v2782_v19  ;;  %1842 = vmatpush.bf16.msrb.mxu3 %v3418_v20  ;;  %v3854_v19 = vld [vmem:[#allocation5 + $0x414] sm:$0xf0]  ;;  %v3760_v20 = vld [vmem:[#allocation5 + $0x12c] sm:$0xf]  ;;  %v3054_v34 = vor.u32 %v3816_v23, %v3051_v24 }
  0xe8   : > { %v3194_v29 = vor.u32 %v3854_v19, %v3193_v18  ;;  %v2830_v30 = vor.u32 %v3760_v20, %v2827_v21  ;;  %v3868_v18 = vld [vmem:[#allocation5 + $0x48c] sm:$0xf]  ;;  %v3259_v19 = vld [vmem:[#allocation5 + $0x498] sm:$0xf0] }
  0xe9   : > { %1885 = vmatpush.bf16.msrb.mxu0 %v2894_v36  ;;  %v3307_v36 = vld [vmem:[#allocation5 + $0x4f8] sm:$0xf0]  ;;  %v3800_v21 = vld [vmem:[#allocation5 + $0x26c] sm:$0xf] }
  0xea   : > { %1830 = vmatpush.bf16.msra.mxu1 %v3258_v35  ;;  %v3880_v35 = vld [vmem:[#allocation5 + $0x4ec] sm:$0xf] }
  0xeb   : > { %1871 = vmatpush.bf16.msrb.mxu2 %v2766_v31  ;;  %1843 = vmatpush.bf16.msrb.mxu3 %v3402_v32  ;;  %v3886_v31 = vld [vmem:[#allocation5 + $0x514] sm:$0xf0]  ;;  %v3848_v32 = vld [vmem:[#allocation5 + $0x3ec] sm:$0xf]  ;;  %v3310_v48 = vor.u32 %v3880_v35, %v3307_v36 }
  0xec   : > { %3457 = vmatmul.msk.bf16.vlgmr.msra.gmra.mxu0 %vm1571_vm0, %v4541_v50  ;;  %v3322_v44 = vor.u32 %v3886_v31, %v3321_v26  ;;  %v3182_v47 = vor.u32 %v3848_v32, %v3179_v33  ;;  %v3900_v23 = vld [vmem:[#allocation5 + $0x58c] sm:$0xf] }
  0xed   : > { %1886 = vmatpush.bf16.msrb.mxu0 %v2878_v51  ;;  %v3038_v51 = vor.u32 %v3812_v38, %v3035_v40  ;;  %v3832_v26 = vld [vmem:[#allocation5 + $0x36c] sm:$0xf]  ;;  %v3099_v40 = vld [vmem:[#allocation5 + $0x358] sm:$0xf0] }
  0xee   : > { %1831 = vmatpush.bf16.msra.mxu1 %v3242_v49  ;;  %v3844_v49 = vld [vmem:[#allocation5 + $0x3cc] sm:$0xf]  ;;  %v3118_v35 = vor.u32 %v3832_v26, %v3115_v28 }
  0xef   : > { %1872 = vmatpush.bf16.msrb.mxu2 %v2750_v45  ;;  %1844 = vmatpush.bf16.msrb.mxu3 %v3386_v46  ;;  %v3912_v45 = vld [vmem:[#allocation5 + $0x5ec] sm:$0xf]  ;;  %v3435_v46 = vld [vmem:[#allocation5 + $0x5f8] sm:$0xf0]  ;;  %v3166_v0 = vor.u32 %v3844_v49, %v3163_v53 }
  0xf0   : > { %v3438_v58 = vor.u32 %v3912_v45, %v3435_v46  ;;  %v3796_v32 = vld [vmem:[#allocation5 + $0x24c] sm:$0xf]  ;;  %v2955_v46 = vld [vmem:[#allocation5 + $0x238] sm:$0xf0] }
  0xf1   : > { %1887 = vmatpush.bf16.msrb.mxu0 %v2862_v2  ;;  %v3840_v2 = vld [vmem:[#allocation5 + $0x3ac] sm:$0xf] }
  0xf2   : > { %1832 = vmatpush.bf16.msra.mxu1 %v3226_v1  ;;  %v3294_v1 = vor.u32 %v3876_v56, %v3291_v57  ;;  %v3150_v13 = vor.u32 %v3840_v2, %v3147_v4  ;;  %v3896_v33 = vld [vmem:[#allocation5 + $0x56c] sm:$0xf]  ;;  %v3083_v57 = vld [vmem:[#allocation5 + $0x338] sm:$0xf0] }
  0xf3   : > { %1873 = vmatpush.bf16.msrb.mxu2 %v2734_v61  ;;  %1845 = vmatpush.bf16.msrb.mxu3 %v3370_v62  ;;  %v3019_v61 = vld [vmem:[#allocation5 + $0x2b8] sm:$0xf0]  ;;  %v3908_v62 = vld [vmem:[#allocation5 + $0x5cc] sm:$0xf] }
  0xf4   : > { %v3022_v3 = vor.u32 %v3808_v59, %v3019_v61  ;;  %v3422_v7 = vor.u32 %v3908_v62, %v3419_v63  ;;  %v3828_v38 = vld [vmem:[#allocation5 + $0x34c] sm:$0xf]  ;;  %v3211_v59 = vld [vmem:[#allocation5 + $0x438] sm:$0xf0] }
  0xf5   : > { %1888 = vmatpush.bf16.msrb.mxu0 %v2846_v15  ;;  %v3836_v15 = vld [vmem:[#allocation5 + $0x38c] sm:$0xf]  ;;  %v3102_v49 = vor.u32 %v3828_v38, %v3099_v40  ;;  %v3339_v2 = vld [vmem:[#allocation5 + $0x538] sm:$0xf0]  ;;  %v3501_v38 = vld [vmem:[#allocation8 + $0x50] sm:$0xf] }
  0xf6   : > { %1833 = vmatpush.bf16.msra.mxu1 %v3210_v14  ;;  %v3278_v14 = vor.u32 %v3872_v5, %v3275_v6  ;;  %v3134_v24 = vor.u32 %v3836_v15, %v3131_v17  ;;  %v3792_v45 = vld [vmem:[#allocation5 + $0x22c] sm:$0xf]  ;;  %v3451_v4 = vld [vmem:[#allocation5 + $0x618] sm:$0xf0] }
  0xf7   : > { %1874 = vmatpush.bf16.msrb.mxu2 %v2718_v10  ;;  %1846 = vmatpush.bf16.msrb.mxu3 %v3354_v11  ;;  %v3003_v10 = vld [vmem:[#allocation5 + $0x298] sm:$0xf0]  ;;  %v3904_v11 = vld [vmem:[#allocation5 + $0x5ac] sm:$0xf]  ;;  %v2958_v56 = vor.u32 %v3792_v45, %v2955_v46 }
  0xf8   : > { %v3006_v16 = vor.u32 %v3804_v9, %v3003_v10  ;;  %v3406_v20 = vor.u32 %v3904_v11, %v3403_v12  ;;  %v3788_v63 = vld [vmem:[#allocation5 + $0x20c] sm:$0xf]  ;;  %v3067_v11 = vld [vmem:[#allocation5 + $0x318] sm:$0xf0] }
  0xf9   : > { %1889 = vmatpush.bf16.msrb.mxu0 %v2830_v30  ;;  %v3243_v30 = vld [vmem:[#allocation5 + $0x478] sm:$0xf0]  ;;  %v3820_v10 = vld [vmem:[#allocation5 + $0x30c] sm:$0xf] }
  0xfa   : > { %1834 = vmatpush.bf16.msra.mxu1 %v3194_v29  ;;  %v3864_v29 = vld [vmem:[#allocation5 + $0x46c] sm:$0xf]  ;;  %v3934_v17 = vld [vmem:[#allocation8 + $0x74] sm:$0xf0] }
  0xfb   : > { %1875 = vmatpush.bf16.msrb.mxu2 %v2702_v22  ;;  %1847 = vmatpush.bf16.msrb.mxu3 %v3338_v25  ;;  %v2987_v22 = vld [vmem:[#allocation5 + $0x278] sm:$0xf0]  ;;  %v3262_v25 = vor.u32 %v3868_v18, %v3259_v19  ;;  %v3246_v36 = vor.u32 %v3864_v29, %v3243_v30  ;;  %v1584_v53 = vpop.f32.mrf.mxu0  ;;  %v3852_v12 = vld [vmem:[#allocation5 + $0x40c] sm:$0xf]  ;;  %v4577_v18 = vld [vmem:[#allocation7] sm:$0xf] }
  0xfc   : > { %v2990_v27 = vor.u32 %v3800_v21, %v2987_v22  ;;  %v3884_v19 = vld [vmem:[#allocation5 + $0x50c] sm:$0xf]  ;;  %v3070_v21 = vor.u32 %v3820_v10, %v3067_v11 }
  0xfd   : > { %1835 = vmatmul.bf16.vlgmr.msra.gmra.mxu1 %v4549_v37  ;;  %1890 = vmatpush.bf16.msrb.mxu0 %v2814_v52  ;;  %v3824_v52 = vld [vmem:[#allocation5 + $0x32c] sm:$0xf]  ;;  %v4573_v61 = vpop.f32.mrf.mxu1 }
  0xfe   : > { %1897 = vmatpush.bf16.msrb.mxu1 %v3054_v34  ;;  %v3371_v34 = vld [vmem:[#allocation5 + $0x578] sm:$0xf0]  ;;  %v3086_v5 = vor.u32 %v3824_v52, %v3083_v57  ;;  %v3932_v28 = vld [vmem:[#allocation8 + $0x64] sm:$0xf0] }
  0xff   : > { %1876 = vmatpush.bf16.msrb.mxu2 %v2686_v39  ;;  %1848 = vmatpush.bf16.msrb.mxu3 %v3322_v44  ;;  %v3374_v44 = vor.u32 %v3896_v33, %v3371_v34  ;;  %v3573_v33 = vld [vmem:[#allocation8 + $0xe0] sm:$0xf]  ;;  %v3948_v34 = vld [vmem:[#allocation8 + $0xe4] sm:$0xf0] }
 0x100   : > { %1891 = vmatmul.bf16.vlgmr.msrb.gmra.mxu0 %v4535_v8  ;;  %v2971_v8 = vld [vmem:[#allocation5 + $0x258] sm:$0xf0]  ;;  %v3574_v40 = vor.u32 %v3948_v34, %v3573_v33 }
 0x101   : > { %1939 = vmatpush.bf16.msra.mxu0 %v3438_v58  ;;  %v2974_v39 = vor.u32 %v3796_v32, %v2971_v8  ;;  %v3856_v58 = vld [vmem:[#allocation5 + $0x42c] sm:$0xf] }
 0x102   : > { %1898 = vmatpush.bf16.msrb.mxu1 %v3038_v51  ;;  %1849 = vmatmul.bf16.vlgmr.msrb.gmra.mxu3 %v4551_v42  ;;  %v3230_v51 = vor.u32 %v3860_v41, %v3227_v43  ;;  %v3214_v6 = vor.u32 %v3856_v58, %v3211_v59  ;;  %v3565_v43 = vld [vmem:[#allocation8 + $0xd0] sm:$0xf]  ;;  %v3926_v58 = vld [vmem:[#allocation8 + $0x34] sm:$0xf0] }
 0x103   : > { %1911 = vmatpush.bf16.msra.mxu3 %v3182_v47  ;;  %1925 = vmatpush.bf16.msra.mxu2 %v3310_v48  ;;  %v3892_v47 = vld [vmem:[#allocation5 + $0x54c] sm:$0xf]  ;;  %v3355_v48 = vld [vmem:[#allocation5 + $0x558] sm:$0xf0]  ;;  %v1586_v30 = vpop.f32.mrf.mxu0  ;;  %v1626_v32 = vpop.f32.mrf.mxu3 }
 0x104   : > { %1877 = vmatmul.bf16.vlgmr.msrb.gmra.mxu2 %v4527_v55  ;;  %v3387_v55 = vld [vmem:[#allocation5 + $0x598] sm:$0xf0]  ;;  %v3358_v62 = vor.u32 %v3892_v47, %v3355_v48  ;;  %v3493_v47 = vld [vmem:[#allocation8 + $0x40] sm:$0xf]  ;;  %v3928_v48 = vld [vmem:[#allocation8 + $0x44] sm:$0xf0] }
 0x105   : > { %1940 = vmatpush.bf16.msra.mxu0 %v3422_v7  ;;  %v3390_v31 = vor.u32 %v3900_v23, %v3387_v55  ;;  %v4575_v7 = vpop.f32.mrf.mxu2  ;;  %v3581_v55 = vld [vmem:[#allocation8 + $0xf0] sm:$0xf] }
 0x106   : > { %1899 = vmatpush.bf16.msrb.mxu1 %v3022_v3  ;;  %v3916_v3 = vld [vmem:[#allocation5 + $0x60c] sm:$0xf] }
 0x107   : > { %1912 = vmatpush.bf16.msra.mxu3 %v3166_v0  ;;  %1926 = vmatpush.bf16.msra.mxu2 %v3294_v1  ;;  %v2939_v0 = vld [vmem:[#allocation5 + $0x218] sm:$0xf0]  ;;  %v3888_v1 = vld [vmem:[#allocation5 + $0x52c] sm:$0xf]  ;;  %v3454_v15 = vor.u32 %v3916_v3, %v3451_v4  ;;  %v3477_v4 = vld [vmem:[#allocation8 + $0x20] sm:$0xf] }
 0x108   : > { %v2942_v9 = vor.u32 %v3788_v63, %v2939_v0  ;;  %v3549_v0 = vld [vmem:[#allocation8 + $0xb0] sm:$0xf] }
 0x109   : > { %1941 = vmatpush.bf16.msra.mxu0 %v3406_v20  ;;  %v3323_v20 = vld [vmem:[#allocation5 + $0x518] sm:$0xf0] }
 0x10a   : > { %1900 = vmatpush.bf16.msrb.mxu1 %v3006_v16  ;;  %v3517_v16 = vld [vmem:[#allocation8 + $0x70] sm:$0xf]  ;;  %v3326_v26 = vor.u32 %v3884_v19, %v3323_v20 }
 0x10b   : > { %1913 = vmatpush.bf16.msra.mxu3 %v3150_v13  ;;  %1927 = vmatpush.bf16.msra.mxu2 %v3278_v14  ;;  %v3342_v13 = vor.u32 %v3888_v1, %v3339_v2  ;;  %v3195_v14 = vld [vmem:[#allocation5 + $0x418] sm:$0xf0]  ;;  %v3518_v23 = vor.u32 %v3934_v17, %v3517_v16  ;;  %v3469_v16 = vld [vmem:[#allocation8 + $0x10] sm:$0xf] }
 0x10c   : > { %v3198_v22 = vor.u32 %v3852_v12, %v3195_v14  ;;  %v3942_v1 = vld [vmem:[#allocation8 + $0xb4] sm:$0xf0]  ;;  %v3940_v14 = vld [vmem:[#allocation8 + $0xa4] sm:$0xf0] }
 0x10d   : > { %1942 = vmatpush.bf16.msra.mxu0 %v3390_v31  ;;  %v1600_v31 = vpop.f32.mrf.mxu1  ;;  %v1614_v41 = vpop.f32.mrf.mxu2  ;;  %v3922_v17 = vld [vmem:[#allocation8 + $0x14] sm:$0xf0] }
 0x10e   : > { %1901 = vmatpush.bf16.msrb.mxu1 %v2990_v27  ;;  %v3509_v27 = vld [vmem:[#allocation8 + $0x60] sm:$0xf] }
 0x10f   : > { %1914 = vmatpush.bf16.msra.mxu3 %v3134_v24  ;;  %1928 = vmatpush.bf16.msra.mxu2 %v3262_v25  ;;  %v3950_v24 = vld [vmem:[#allocation8 + $0xf4] sm:$0xf0]  ;;  %v583_v25 = vperm.slane %v4577_v18, 0  ;;  %v3510_v8 = vor.u32 %v3932_v28, %v3509_v27  ;;  %v3933_v27 = vld [vmem:[#allocation8 + $0x74] sm:$0xf] }
 0x110   : > { %v3582_v29 = vor.u32 %v3950_v24, %v3581_v55  ;;  %v3938_v55 = vld [vmem:[#allocation8 + $0x94] sm:$0xf0]  ;;  %v3519_v28 = vld [vmem:[#allocation8 + $0x78] sm:$0xf0] }
 0x111   : > { %1943 = vmatpush.bf16.msra.mxu0 %v3374_v44  ;;  %v3946_v44 = vld [vmem:[#allocation8 + $0xd4] sm:$0xf0]  ;;  %v3522_v34 = vor.u32 %v3933_v27, %v3519_v28  ;;  %v3535_v27 = vld [vmem:[#allocation8 + $0x98] sm:$0xf0] }
 0x112   : > { %1902 = vmatpush.bf16.msrb.mxu1 %v2974_v39  ;;  %v3930_v39 = vld [vmem:[#allocation8 + $0x54] sm:$0xf0] }
 0x113   : > { %1915 = vmatpush.bf16.msra.mxu3 %v3118_v35  ;;  %1929 = vmatpush.bf16.msra.mxu2 %v3246_v36  ;;  %v1585_v35 = vadd.f32 %v1584_v53, %v583_v25  ;;  %v1587_v36 = vadd.f32 %v1586_v30, %v583_v25  ;;  %v3494_v53 = vor.u32 %v3928_v48, %v3493_v47  ;;  %v3461_v25 = vld [vmem:[#allocation8] sm:$0xf]  ;;  %v3929_v47 = vld [vmem:[#allocation8 + $0x54] sm:$0xf]  ;;  %v3503_v48 = vld [vmem:[#allocation8 + $0x58] sm:$0xf0] }
 0x115   : > { %1944 = vmatpush.bf16.msra.mxu0 %v3358_v62  ;;  %v1599_v45 = vadd.f32 %v4573_v61, %v1585_v35  ;;  %v1601_v46 = vadd.f32 %v1600_v31, %v1587_v36  ;;  %v1628_v62 = vpop.f32.mrf.mxu3  ;;  %v1668_v61 = vpop.f32.mrf.mxu2  ;;  %v3525_v31 = vld [vmem:[#allocation8 + $0x80] sm:$0xf]  ;;  %v3949_v36 = vld [vmem:[#allocation8 + $0xf4] sm:$0xf] }
 0x116   : > { %1903 = vmatpush.bf16.msrb.mxu1 %v2958_v56  ;;  %v3944_v56 = vld [vmem:[#allocation8 + $0xc4] sm:$0xf0] }
 0x117   : > { %1916 = vmatpush.bf16.msra.mxu3 %v3102_v49  ;;  %1930 = vmatpush.bf16.msra.mxu2 %v3230_v51  ;;  %v3566_v49 = vor.u32 %v3946_v44, %v3565_v43  ;;  %v1615_v57 = vadd.f32 %v1614_v41, %v1601_v46  ;;  %v3575_v46 = vld [vmem:[#allocation8 + $0xe8] sm:$0xf0] }
 0x119   : > { %1945 = vmatpush.bf16.msra.mxu0 %v3342_v13  ;;  %v1640_v51 = vpop.f32.mrf.mxu0  ;;  %v1629_v3 = vadd.f32 %v1628_v62, %v1615_v57  ;;  %v3541_v13 = vld [vmem:[#allocation8 + $0xa0] sm:$0xf]  ;;  %v3559_v62 = vld [vmem:[#allocation8 + $0xc8] sm:$0xf0] }
 0x11a   : > { %1904 = vmatpush.bf16.msrb.mxu1 %v2942_v9  ;;  %v1654_v52 = vpop.f32.mrf.mxu1  ;;  %v3542_v19 = vor.u32 %v3940_v14, %v3541_v13 }
 0x11b   : > { %1917 = vmatpush.bf16.msra.mxu3 %v3086_v5  ;;  %1931 = vmatpush.bf16.msra.mxu2 %v3214_v6  ;;  %v3924_v5 = vld [vmem:[#allocation8 + $0x24] sm:$0xf0]  ;;  %v3550_v6 = vor.u32 %v3942_v1, %v3549_v0 }
 0x11c   : > { %v3478_v12 = vor.u32 %v3924_v5, %v3477_v4  ;;  %v3923_v4 = vld [vmem:[#allocation8 + $0x24] sm:$0xf]  ;;  %v3479_v5 = vld [vmem:[#allocation8 + $0x28] sm:$0xf0] }
 0x11d   : > { %1905 = vmatmul.bf16.vlgmr.msrb.gmra.mxu1 %v4525_v54  ;;  %1946 = vmatpush.bf16.msra.mxu0 %v3326_v26  ;;  %v3502_v54 = vor.u32 %v3930_v39, %v3501_v38  ;;  %v3583_v38 = vld [vmem:[#allocation8 + $0xf8] sm:$0xf0]  ;;  %v3931_v39 = vld [vmem:[#allocation8 + $0x64] sm:$0xf] }
 0x11e   : > { %1960 = vmatpush.bf16.msra.mxu1 %v3454_v15  ;;  %v3586_v41 = vor.u32 %v3949_v36, %v3583_v38 }
 0x11f   : > { %1918 = vmatpush.bf16.msra.mxu3 %v3070_v21  ;;  %1932 = vmatpush.bf16.msra.mxu2 %v3198_v22  ;;  %v1670_v21 = vpop.f32.mrf.mxu2  ;;  %v3470_v22 = vor.u32 %v3922_v17, %v3469_v16  ;;  %v3939_v16 = vld [vmem:[#allocation8 + $0xa4] sm:$0xf]  ;;  %v3543_v17 = vld [vmem:[#allocation8 + $0xa8] sm:$0xf0] }
 0x120   : > { %1947 = vmatmul.bf16.vlgmr.msra.gmra.mxu0 %v4551_v42  ;;  %v3485_v42 = vld [vmem:[#allocation8 + $0x30] sm:$0xf] }
 0x121   : > { %v3486_v63 = vor.u32 %v3926_v58, %v3485_v42  ;;  %v1642_v9 = vpop.f32.mrf.mxu0  ;;  %v4588_v33 = vpop.f32.mrf.mxu3 }
 0x122   : > { %2383 = vmatpush.bf16.msrb.mxu1 %v3582_v29  ;;  %1919 = vmatmul.bf16.vlgmr.msra.gmra.mxu3 %v4529_v60  ;;  %v3557_v60 = vld [vmem:[#allocation8 + $0xc0] sm:$0xf]  ;;  %v1656_v11 = vpop.f32.mrf.mxu1 }
 0x123   : > { %2369 = vmatpush.bf16.msrb.mxu3 %v3518_v23  ;;  %1933 = vmatmul.bf16.vlgmr.msra.gmra.mxu2 %v4549_v37  ;;  %v1613_v37 = vadd.f32 %v4575_v7, %v1599_v45  ;;  %v3558_v59 = vor.u32 %v3944_v56, %v3557_v60  ;;  %v1643_v7 = vadd.f32 %v1642_v9, %v1629_v3  ;;  %v3533_v23 = vld [vmem:[#allocation8 + $0x90] sm:$0xf]  ;;  %v3947_v45 = vld [vmem:[#allocation8 + $0xe4] sm:$0xf]  ;;  %v3495_v56 = vld [vmem:[#allocation8 + $0x48] sm:$0xf0] }
 0x124   : > { %v3534_v26 = vor.u32 %v3938_v55, %v3533_v23  ;;  %v3927_v60 = vld [vmem:[#allocation8 + $0x44] sm:$0xf]  ;;  %v3551_v3 = vld [vmem:[#allocation8 + $0xb8] sm:$0xf0]  ;;  %v3637_v23 = vld [vmem:[#allocation8 + $0x160] sm:$0xf] }
 0x125   : > { %v1627_v2 = vadd.f32 %v1626_v32, %v1613_v37  ;;  %v1657_v15 = vadd.f32 %v1656_v11, %v1643_v7  ;;  %v3936_v32 = vld [vmem:[#allocation8 + $0x84] sm:$0xf0]  ;;  %v3498_v58 = vor.u32 %v3927_v60, %v3495_v56  ;;  %v3645_v7 = vld [vmem:[#allocation8 + $0x170] sm:$0xf]  ;;  %v3966_v11 = vld [vmem:[#allocation8 + $0x174] sm:$0xf0] }
 0x126   : > { %2384 = vmatpush.bf16.msrb.mxu1 %v3574_v40  ;;  %v3526_v35 = vor.u32 %v3936_v32, %v3525_v31  ;;  %v3511_v40 = vld [vmem:[#allocation8 + $0x68] sm:$0xf0]  ;;  %v3646_v13 = vor.u32 %v3966_v11, %v3645_v7  ;;  %v3964_v55 = vld [vmem:[#allocation8 + $0x164] sm:$0xf0]  ;;  %v3958_v60 = vld [vmem:[#allocation8 + $0x134] sm:$0xf0] }
 0x127   : > { %2370 = vmatpush.bf16.msrb.mxu3 %v3510_v8  ;;  %v1641_v10 = vadd.f32 %v1640_v51, %v1627_v2  ;;  %v1671_v24 = vadd.f32 %v1670_v21, %v1657_v15  ;;  %v3514_v44 = vor.u32 %v3931_v39, %v3511_v40  ;;  %v3506_v51 = vor.u32 %v3929_v47, %v3503_v48  ;;  %v1696_v57 = vpop.f32.mrf.mxu2  ;;  %v3941_v2 = vld [vmem:[#allocation8 + $0xb4] sm:$0xf]  ;;  %v3935_v40 = vld [vmem:[#allocation8 + $0x84] sm:$0xf]  ;;  %v3960_v47 = vld [vmem:[#allocation8 + $0x144] sm:$0xf0] }
 0x128   : > { %v3482_v15 = vor.u32 %v3923_v4, %v3479_v5  ;;  %2397 = vmatpush.bf16.msrb.mxu2 %v3646_v13  ;;  %v3546_v21 = vor.u32 %v3939_v16, %v3543_v17  ;;  %v3589_v11 = vld [vmem:[#allocation8 + $0x100] sm:$0xf]  ;;  %v3963_v17 = vld [vmem:[#allocation8 + $0x164] sm:$0xf] }
 0x129   : > { %v1655_v20 = vadd.f32 %v1654_v52, %v1641_v10  ;;  %v1971_v8 = vmax.f32 %v1671_v24, 0.0  ;;  %v3945_v52 = vld [vmem:[#allocation8 + $0xd4] sm:$0xf]  ;;  %v1684_v42 = vpop.f32.mrf.mxu3 }
 0x12a   : > { %2385 = vmatpush.bf16.msrb.mxu1 %v3566_v49  ;;  %v3578_v49 = vor.u32 %v3947_v45, %v3575_v46  ;;  %v3621_v46 = vld [vmem:[#allocation8 + $0x140] sm:$0xf] }
 0x12b   : > { %2371 = vmatpush.bf16.msrb.mxu3 %v3502_v54  ;;  %v1669_v29 = vadd.f32 %v1668_v61, %v1655_v20  ;;  %v3925_v61 = vld [vmem:[#allocation8 + $0x34] sm:$0xf]  ;;  %v3471_v20 = vld [vmem:[#allocation8 + $0x18] sm:$0xf0] }
 0x12d   : > { %3458 = vmatmul.msk.bf16.vlgmr.msra.gmra.mxu1 %vm1571_vm0, %v4541_v50  ;;  %v3920_v50 = vld [vmem:[#allocation8 + $0x4] sm:$0xf0]  ;;  %v1967_v54 = vmax.f32 %v1669_v29, 0.0  ;;  %v3919_v29 = vld [vmem:[#allocation8 + $0x4] sm:$0xf] }
 0x12e   : > { %2386 = vmatpush.bf16.msrb.mxu1 %v3558_v59  ;;  %v3462_v30 = vor.u32 %v3920_v50, %v3461_v25  ;;  %v3943_v59 = vld [vmem:[#allocation8 + $0xc4] sm:$0xf]  ;;  %v3638_v25 = vor.u32 %v3964_v55, %v3637_v23  ;;  %v3982_v23 = vld [vmem:[#allocation8 + $0x1f4] sm:$0xf0] }
 0x12f   : > { %2372 = vmatpush.bf16.msrb.mxu3 %v3494_v53  ;;  %v4590_v43 = vpack.c.bf16 %v1971_v8, %v1967_v54  ;;  %v3567_v53 = vld [vmem:[#allocation8 + $0xd8] sm:$0xf0]  ;;  %v3562_v0 = vor.u32 %v3943_v59, %v3559_v62  ;;  %v1698_v14 = vpop.f32.mrf.mxu2  ;;  %v3629_v8 = vld [vmem:[#allocation8 + $0x150] sm:$0xf]  ;;  %v3605_v62 = vld [vmem:[#allocation8 + $0x120] sm:$0xf] }
 0x130   : > { %v3570_v37 = vor.u32 %v3945_v52, %v3567_v53  ;;  %2398 = vmatpush.bf16.msrb.mxu2 %v3638_v25  ;;  %v3613_v53 = vld [vmem:[#allocation8 + $0x130] sm:$0xf]  ;;  %v3961_v25 = vld [vmem:[#allocation8 + $0x154] sm:$0xf] }
 0x132   : > { %2387 = vmatpush.bf16.msrb.mxu1 %v3550_v6  ;;  %v3554_v6 = vor.u32 %v3941_v2, %v3551_v3  ;;  %v3954_v2 = vld [vmem:[#allocation8 + $0x114] sm:$0xf0] }
 0x133   : > { %2373 = vmatpush.bf16.msrb.mxu3 %v3486_v63  ;;  %v3487_v63 = vld [vmem:[#allocation8 + $0x38] sm:$0xf0] }
 0x134   : > { %v3490_v1 = vor.u32 %v3925_v61, %v3487_v63  ;;  %v3956_v61 = vld [vmem:[#allocation8 + $0x124] sm:$0xf0] }
 0x136   : > { %2388 = vmatpush.bf16.msrb.mxu1 %v3542_v19  ;;  %v3921_v19 = vld [vmem:[#allocation8 + $0x14] sm:$0xf] }
 0x137   : > { %2374 = vmatpush.bf16.msrb.mxu3 %v3478_v12  ;;  %v584_v12 = vperm.slane %v4577_v18, 1  ;;  %v3474_v50 = vor.u32 %v3921_v19, %v3471_v20  ;;  %v3639_v19 = vld [vmem:[#allocation8 + $0x168] sm:$0xf0] }
 0x139   : > { %v1710_v9 = vpop.f32.mrf.mxu0  ;;  %v1683_v24 = vadd.f32 %v4588_v33, %v584_v12  ;;  %v1685_v28 = vadd.f32 %v1684_v42, %v584_v12 }
 0x13a   : > { %2389 = vmatpush.bf16.msrb.mxu1 %v3534_v26  ;;  %v3937_v26 = vld [vmem:[#allocation8 + $0x94] sm:$0xf] }
 0x13b   : > { %2375 = vmatpush.bf16.msrb.mxu3 %v3470_v22  ;;  %v1724_v22 = vpop.f32.mrf.mxu1  ;;  %v3538_v31 = vor.u32 %v3937_v26, %v3535_v27  ;;  %v1699_v54 = vadd.f32 %v1698_v14, %v1685_v28  ;;  %v3965_v14 = vld [vmem:[#allocation8 + $0x174] sm:$0xf]  ;;  %v3701_v27 = vld [vmem:[#allocation8 + $0x1e0] sm:$0xf]  ;;  %v3980_v28 = vld [vmem:[#allocation8 + $0x1e4] sm:$0xf0] }
 0x13e   : > { %2390 = vmatpush.bf16.msrb.mxu1 %v3526_v35  ;;  %v1697_v35 = vadd.f32 %v1696_v57, %v1683_v24 }
 0x13f   : > { %2376 = vmatpush.bf16.msrb.mxu3 %v3462_v30  ;;  %v3463_v30 = vld [vmem:[#allocation8 + $0x8] sm:$0xf0] }
 0x140   : > { %v3466_v33 = vor.u32 %v3919_v29, %v3463_v30  ;;  %v3702_v29 = vor.u32 %v3980_v28, %v3701_v27  ;;  %v3959_v30 = vld [vmem:[#allocation8 + $0x144] sm:$0xf] }
 0x141   : > { %v1738_v10 = vpop.f32.mrf.mxu3  ;;  %v1712_v38 = vpop.f32.mrf.mxu0 }
 0x142   : > { %2439 = vmatpush.bf16.msra.mxu1 %v3586_v41  ;;  %2377 = vmatmul.bf16.vlgmr.msrb.gmra.mxu3 %v4590_v43  ;;  %v3527_v41 = vld [vmem:[#allocation8 + $0x88] sm:$0xf0]  ;;  %v1713_v48 = vadd.f32 %v1712_v38, %v1699_v54  ;;  %v3685_v54 = vld [vmem:[#allocation8 + $0x1c0] sm:$0xf] }
 0x143   : > { %2425 = vmatpush.bf16.msra.mxu3 %v3522_v34  ;;  %v3962_v34 = vld [vmem:[#allocation8 + $0x154] sm:$0xf0]  ;;  %v3530_v45 = vor.u32 %v3935_v40, %v3527_v41  ;;  %v585_v40 = vperm.slane %v4577_v18, 2 }
 0x144   : > { %v3630_v36 = vor.u32 %v3962_v34, %v3629_v8  ;;  %v3693_v8 = vld [vmem:[#allocation8 + $0x1d0] sm:$0xf]  ;;  %v3978_v34 = vld [vmem:[#allocation8 + $0x1d4] sm:$0xf0] }
 0x145   : > { %v1752_v39 = vpop.f32.mrf.mxu2 }
 0x146   : > { %2440 = vmatpush.bf16.msra.mxu1 %v3578_v49  ;;  %2399 = vmatpush.bf16.msrb.mxu2 %v3630_v36  ;;  %v3622_v49 = vor.u32 %v3960_v47, %v3621_v46  ;;  %v3694_v36 = vor.u32 %v3978_v34, %v3693_v8  ;;  %v3955_v47 = vld [vmem:[#allocation8 + $0x124] sm:$0xf]  ;;  %v3695_v8 = vld [vmem:[#allocation8 + $0x1d8] sm:$0xf0] }
 0x147   : > { %2426 = vmatpush.bf16.msra.mxu3 %v3514_v44  ;;  %v1711_v44 = vadd.f32 %v1710_v9, %v1697_v35 }
 0x149   : > { %v1740_v32 = vpop.f32.mrf.mxu3  ;;  %v1725_v52 = vadd.f32 %v1724_v22, %v1711_v44  ;;  %v3709_v22 = vld [vmem:[#allocation8 + $0x1f0] sm:$0xf]  ;;  %v3976_v44 = vld [vmem:[#allocation8 + $0x1c4] sm:$0xf0] }
 0x14a   : > { %2441 = vmatpush.bf16.msra.mxu1 %v3570_v37  ;;  %2400 = vmatpush.bf16.msrb.mxu2 %v3622_v49  ;;  %v3614_v37 = vor.u32 %v3958_v60, %v3613_v53  ;;  %v3710_v55 = vor.u32 %v3982_v23, %v3709_v22  ;;  %v3686_v46 = vor.u32 %v3976_v44, %v3685_v54  ;;  %v3974_v53 = vld [vmem:[#allocation8 + $0x1b4] sm:$0xf0]  ;;  %v3711_v22 = vld [vmem:[#allocation8 + $0x1f8] sm:$0xf0] }
 0x14b   : > { %2427 = vmatpush.bf16.msra.mxu3 %v3506_v51  ;;  %v1726_v51 = vpop.f32.mrf.mxu1  ;;  %v1739_v57 = vadd.f32 %v1738_v10, %v1725_v52  ;;  %v3677_v52 = vld [vmem:[#allocation8 + $0x1b0] sm:$0xf] }
 0x14c   : > { %v1727_v42 = vadd.f32 %v1726_v51, %v1713_v48  ;;  %2411 = vmatpush.bf16.msrb.mxu0 %v3710_v55  ;;  %v3607_v48 = vld [vmem:[#allocation8 + $0x128] sm:$0xf0]  ;;  %v3678_v60 = vor.u32 %v3974_v53, %v3677_v52 }
 0x14d   : > { %v1754_v59 = vpop.f32.mrf.mxu2  ;;  %v1753_v63 = vadd.f32 %v1752_v39, %v1739_v57  ;;  %v3957_v39 = vld [vmem:[#allocation8 + $0x134] sm:$0xf]  ;;  %v3610_v51 = vor.u32 %v3955_v47, %v3607_v48  ;;  %v3679_v47 = vld [vmem:[#allocation8 + $0x1b8] sm:$0xf0] }
 0x14e   : > { %2442 = vmatpush.bf16.msra.mxu1 %v3562_v0  ;;  %2401 = vmatpush.bf16.msrb.mxu2 %v3614_v37  ;;  %v3606_v0 = vor.u32 %v3956_v61, %v3605_v62 }
 0x14f   : > { %2428 = vmatpush.bf16.msra.mxu3 %v3498_v58  ;;  %v1741_v58 = vadd.f32 %v1740_v32, %v1727_v42  ;;  %v3953_v42 = vld [vmem:[#allocation8 + $0x114] sm:$0xf] }
 0x150   : > { %2412 = vmatpush.bf16.msrb.mxu0 %v3702_v29 }
 0x151   : > { %v1766_v56 = vpop.f32.mrf.mxu3  ;;  %v1755_v3 = vadd.f32 %v1754_v59, %v1741_v58  ;;  %v3599_v58 = vld [vmem:[#allocation8 + $0x118] sm:$0xf0] }
 0x152   : > { %2443 = vmatpush.bf16.msra.mxu1 %v3554_v6  ;;  %v1767_v4 = vadd.f32 %v1766_v56, %v1753_v63  ;;  %2402 = vmatpush.bf16.msrb.mxu2 %v3606_v0  ;;  %v3602_v61 = vor.u32 %v3953_v42, %v3599_v58  ;;  %v3669_v63 = vld [vmem:[#allocation8 + $0x1a0] sm:$0xf]  ;;  %v3972_v0 = vld [vmem:[#allocation8 + $0x1a4] sm:$0xf0]  ;;  %v3969_v42 = vld [vmem:[#allocation8 + $0x194] sm:$0xf] }
 0x153   : > { %2429 = vmatpush.bf16.msra.mxu3 %v3490_v1  ;;  %v3597_v1 = vld [vmem:[#allocation8 + $0x110] sm:$0xf]  ;;  %v3663_v58 = vld [vmem:[#allocation8 + $0x198] sm:$0xf0] }
 0x154   : > { %v3598_v5 = vor.u32 %v3954_v2, %v3597_v1  ;;  %v1968_v7 = vmax.f32 %v1767_v4, 0.0  ;;  %2413 = vmatpush.bf16.msrb.mxu0 %v3694_v36  ;;  %v3670_v2 = vor.u32 %v3972_v0, %v3669_v63  ;;  %v3591_v4 = vld [vmem:[#allocation8 + $0x108] sm:$0xf0] }
 0x156   : > { %2444 = vmatpush.bf16.msra.mxu1 %v3546_v21  ;;  %2403 = vmatpush.bf16.msrb.mxu2 %v3598_v5  ;;  %v3642_v21 = vor.u32 %v3963_v17, %v3639_v19 }
 0x157   : > { %2430 = vmatpush.bf16.msra.mxu3 %v3482_v15  ;;  %v3647_v15 = vld [vmem:[#allocation8 + $0x178] sm:$0xf0] }
 0x158   : > { %v3650_v16 = vor.u32 %v3965_v14, %v3647_v15  ;;  %2414 = vmatpush.bf16.msrb.mxu0 %v3686_v46  ;;  %v3653_v15 = vld [vmem:[#allocation8 + $0x180] sm:$0xf]  ;;  %v3973_v46 = vld [vmem:[#allocation8 + $0x1b4] sm:$0xf] }
 0x159   : > { %v1768_v6 = vpop.f32.mrf.mxu3  ;;  %v1808_v20 = vpop.f32.mrf.mxu0  ;;  %v3682_v48 = vor.u32 %v3973_v46, %v3679_v47 }
 0x15a   : > { %2445 = vmatpush.bf16.msra.mxu1 %v3538_v31  ;;  %v1769_v9 = vadd.f32 %v1768_v6, %v1755_v3  ;;  %v1780_v24 = vpop.f32.mrf.mxu1  ;;  %v3623_v31 = vld [vmem:[#allocation8 + $0x148] sm:$0xf0]  ;;  %v3951_v3 = vld [vmem:[#allocation8 + $0x104] sm:$0xf] }
 0x15b   : > { %2431 = vmatpush.bf16.msra.mxu3 %v3474_v50  ;;  %v3631_v50 = vld [vmem:[#allocation8 + $0x158] sm:$0xf0]  ;;  %v3626_v32 = vor.u32 %v3959_v30, %v3623_v31  ;;  %v1781_v49 = vadd.f32 %v1780_v24, %v585_v40 }
 0x15c   : > { %v1972_v10 = vmax.f32 %v1769_v9, 0.0  ;;  %v3634_v26 = vor.u32 %v3961_v25, %v3631_v50  ;;  %2415 = vmatpush.bf16.msrb.mxu0 %v3678_v60  ;;  %v3594_v9 = vor.u32 %v3951_v3, %v3591_v4  ;;  %v3979_v50 = vld [vmem:[#allocation8 + $0x1e4] sm:$0xf] }
 0x15e   : > { %2446 = vmatpush.bf16.msra.mxu1 %v3530_v45  ;;  %v1976_v12 = vpack.c.bf16 %v1972_v10, %v1968_v7  ;;  %v3661_v7 = vld [vmem:[#allocation8 + $0x190] sm:$0xf]  ;;  %v3970_v10 = vld [vmem:[#allocation8 + $0x194] sm:$0xf0] }
 0x15f   : > { %2432 = vmatpush.bf16.msra.mxu3 %v3466_v33  ;;  %v3615_v33 = vld [vmem:[#allocation8 + $0x138] sm:$0xf0] }
 0x160   : > { %2391 = vmatmul.bf16.vlgmr.msrb.gmra.mxu1 %v1976_v12  ;;  %v3618_v41 = vor.u32 %v3957_v39, %v3615_v33  ;;  %2416 = vmatpush.bf16.msrb.mxu0 %v3670_v2 }
 0x161   : > { %v1810_v38 = vpop.f32.mrf.mxu0 }
 0x162   : > { %2433 = vmatmul.bf16.vlgmr.msra.gmra.mxu3 %v4590_v43  ;;  %v3952_v43 = vld [vmem:[#allocation8 + $0x104] sm:$0xf0]  ;;  %v1782_v45 = vpop.f32.mrf.mxu1 }
 0x163   : > { %v3590_v13 = vor.u32 %v3952_v43, %v3589_v11  ;;  %v1783_v62 = vadd.f32 %v1782_v45, %v585_v40  ;;  %v3662_v11 = vor.u32 %v3970_v10, %v3661_v7  ;;  %v3975_v40 = vld [vmem:[#allocation8 + $0x1c4] sm:$0xf]  ;;  %v586_v45 = vperm.slane %v4577_v18, 3  ;;  %v3655_v18 = vld [vmem:[#allocation8 + $0x188] sm:$0xf0] }
 0x165   : > { %2404 = vmatpush.bf16.msrb.mxu2 %v3590_v13  ;;  %v1794_v35 = vpop.f32.mrf.mxu3  ;;  %2417 = vmatpush.bf16.msrb.mxu0 %v3662_v11 }
 0x166   : > { %v1795_v59 = vadd.f32 %v1794_v35, %v1781_v49  ;;  %v3971_v49 = vld [vmem:[#allocation8 + $0x1a4] sm:$0xf] }
 0x167   : > { %v1822_v37 = vpop.f32.mrf.mxu2 }
 0x168   : > { %v1809_v5 = vadd.f32 %v1808_v20, %v1795_v59  ;;  %v3666_v59 = vor.u32 %v3969_v42, %v3663_v58 }
 0x169   : > { %2453 = vmatpush.bf16.msra.mxu2 %v3650_v16  ;;  %v1864_v56 = vpop.f32.mrf.mxu0  ;;  %v3968_v16 = vld [vmem:[#allocation8 + $0x184] sm:$0xf0] }
 0x16a   : > { %v3654_v19 = vor.u32 %v3968_v16, %v3653_v15 }
 0x16c   : > { %2418 = vmatpush.bf16.msrb.mxu0 %v3654_v19 }
 0x16d   : > { %2454 = vmatpush.bf16.msra.mxu2 %v3642_v21  ;;  %v1796_v57 = vpop.f32.mrf.mxu3  ;;  %v3981_v21 = vld [vmem:[#allocation8 + $0x1f4] sm:$0xf] }
 0x16e   : > { %v1797_v6 = vadd.f32 %v1796_v57, %v1783_v62  ;;  %v3714_v55 = vor.u32 %v3981_v21, %v3711_v22  ;;  %v3967_v62 = vld [vmem:[#allocation8 + $0x184] sm:$0xf] }
 0x16f   : > { %v1824_v17 = vpop.f32.mrf.mxu2 }
 0x170   : > { %2447 = vmatmul.bf16.vlgmr.msra.gmra.mxu1 %v1976_v12  ;;  %v1823_v12 = vadd.f32 %v1822_v37, %v1809_v5  ;;  %v1811_v13 = vadd.f32 %v1810_v38, %v1797_v6  ;;  %2467 = vmatpush.bf16.msra.mxu0 %v3714_v55 }
 0x171   : > { %2455 = vmatpush.bf16.msra.mxu2 %v3634_v26  ;;  %v1866_v14 = vpop.f32.mrf.mxu0  ;;  %v3703_v26 = vld [vmem:[#allocation8 + $0x1e8] sm:$0xf0] }
 0x172   : > { %v1825_v24 = vadd.f32 %v1824_v17, %v1811_v13  ;;  %v3706_v28 = vor.u32 %v3979_v50, %v3703_v26 }
 0x174   : > { %2468 = vmatpush.bf16.msra.mxu0 %v3706_v28 }
 0x175   : > { %2456 = vmatpush.bf16.msra.mxu2 %v3626_v32  ;;  %v3977_v32 = vld [vmem:[#allocation8 + $0x1d4] sm:$0xf] }
 0x176   : > { %v3698_v36 = vor.u32 %v3977_v32, %v3695_v8 }
 0x178   : > { %2469 = vmatpush.bf16.msra.mxu0 %v3698_v36 }
 0x179   : > { %2457 = vmatpush.bf16.msra.mxu2 %v3618_v41  ;;  %v3687_v41 = vld [vmem:[#allocation8 + $0x1c8] sm:$0xf0] }
 0x17a   : > { %v1836_v1 = vpop.f32.mrf.mxu1  ;;  %v3690_v44 = vor.u32 %v3975_v40, %v3687_v41 }
 0x17b   : > { %v1837_v23 = vadd.f32 %v1836_v1, %v1823_v12  ;;  %v3658_v1 = vor.u32 %v3967_v62, %v3655_v18 }
 0x17c   : > { %2470 = vmatpush.bf16.msra.mxu0 %v3690_v44 }
 0x17d   : > { %2458 = vmatpush.bf16.msra.mxu2 %v3610_v51  ;;  %v1892_v35 = vpop.f32.mrf.mxu0  ;;  %v3671_v51 = vld [vmem:[#allocation8 + $0x1a8] sm:$0xf0] }
 0x180   : > { %2471 = vmatpush.bf16.msra.mxu0 %v3682_v48 }
 0x181   : > { %2459 = vmatpush.bf16.msra.mxu2 %v3602_v61 }
 0x182   : > { %v1838_v20 = vpop.f32.mrf.mxu1 }
 0x183   : > { %v1839_v27 = vadd.f32 %v1838_v20, %v1825_v24 }
 0x185   : > { %2460 = vmatpush.bf16.msra.mxu2 %v3594_v9  ;;  %v1850_v43 = vpop.f32.mrf.mxu3  ;;  %v1894_v60 = vpop.f32.mrf.mxu0 }
 0x186   : > { %v1851_v25 = vadd.f32 %v1850_v43, %v1837_v23 }
 0x187   : > { %v1878_v38 = vpop.f32.mrf.mxu2 }
 0x188   : > { %v1865_v30 = vadd.f32 %v1864_v56, %v1851_v25  ;;  %v1879_v53 = vadd.f32 %v1878_v38, %v586_v45  ;;  %v3674_v56 = vor.u32 %v3971_v49, %v3671_v51 }
 0x18a   : > { %v1969_v39 = vmax.f32 %v1865_v30, 0.0  ;;  %v1893_v57 = vadd.f32 %v1892_v35, %v1879_v53  ;;  %2472 = vmatpush.bf16.msra.mxu0 %v3674_v56 }
 0x18d   : > { %v1852_v29 = vpop.f32.mrf.mxu3 }
 0x18e   : > { %v1853_v31 = vadd.f32 %v1852_v29, %v1839_v27  ;;  %2473 = vmatpush.bf16.msra.mxu0 %v3666_v59  ;;  %v2043_v29 = vld [vmem:[%s4642_s4] sm:$0x3] }
 0x18f   : > { %v1880_v37 = vpop.f32.mrf.mxu2  ;;  %v2045_v38 = vperm.slane %v2043_v29, 0 }
 0x190   : > { %v1867_v34 = vadd.f32 %v1866_v14, %v1853_v31  ;;  %v1881_v2 = vadd.f32 %v1880_v37, %v586_v45  ;;  %v2046_v31 = vperm.slane %v2043_v29, 1  ;;  %v2491_v37 = vlaneseq }
 0x192   : > { %v1973_v33 = vmax.f32 %v1867_v34, 0.0  ;;  %2474 = vmatpush.bf16.msra.mxu0 %v3658_v1  ;;  %v1895_v6 = vadd.f32 %v1894_v60, %v1881_v2 }
 0x194   : > { %v1977_v54 = vpack.c.bf16 %v1973_v33, %v1969_v39 }
 0x196   : > { %2405 = vmatmul.bf16.vlgmr.msrb.gmra.mxu2 %v1977_v54 }
 0x19a   : > { %v1906_v52 = vpop.f32.mrf.mxu1 }
 0x19b   : > { %v1907_v63 = vadd.f32 %v1906_v52, %v1893_v57  ;;  %v2485_v57 = vld [vmem:[%s4513_s8] sm:$0xff] }
 0x19d   : > { %v1948_v4 = vpop.f32.mrf.mxu0 }
 0x1a2   : > { %v1908_v61 = vpop.f32.mrf.mxu1 }
 0x1a3   : > { %v1909_v7 = vadd.f32 %v1908_v61, %v1895_v6  ;;  %v2486_v6 = vld [vmem:[%s4513_s8 + $0x8] sm:$0xff] }
 0x1a5   : > { %v1920_v0 = vpop.f32.mrf.mxu3  ;;  %v1950_v15 = vpop.f32.mrf.mxu0 }
 0x1a6   : > { %v1934_v3 = vpop.f32.mrf.mxu2  ;;  %v1921_v5 = vadd.f32 %v1920_v0, %v1907_v63  ;;  %2461 = vmatmul.bf16.vlgmr.msra.gmra.mxu2 %v1977_v54  ;;  %v2492_v0 = vand.u32 127, %v2491_v37 }
 0x1a8   : > { %v1935_v9 = vadd.f32 %v1934_v3, %v1921_v5  ;;  %vm2493_vm1 = vcmp.lt.s32.totalorder %v2492_v0, 32  ;;  %vm2510_vm2 = vcmp.eq.s32.totalorder %v2492_v0, 32 }
 0x1aa   : > { %v1962_v10 = vpop.f32.mrf.mxu1  ;;  %v1949_v12 = vadd.f32 %v1948_v4, %v1935_v9 }
 0x1ac   : > { %v1963_v17 = vadd.f32 %v1962_v10, %v1949_v12 }
 0x1ad   : > { %v1922_v11 = vpop.f32.mrf.mxu3 }
 0x1ae   : > { %v1923_v43 = vadd.f32 %v1922_v11, %v1909_v7  ;;  %v1936_v13 = vpop.f32.mrf.mxu2  ;;  %v1970_v22 = vmax.f32 %v1963_v17, 0.0 }
 0x1b0   : > { %v1937_v14 = vadd.f32 %v1936_v13, %v1923_v43 }
 0x1b2   : > { %v1951_v16 = vadd.f32 %v1950_v15, %v1937_v14  ;;  %v1964_v19 = vpop.f32.mrf.mxu1 }
 0x1b4   : > { %v1965_v21 = vadd.f32 %v1964_v19, %v1951_v16 }
 0x1b6   : > { %v1974_v23 = vmax.f32 %v1965_v21, 0.0 }
 0x1b8   : > { %v1978_v55 = vpack.c.bf16 %v1974_v23, %v1970_v22 }
 0x1ba   : > { %2419 = vmatmul.bf16.vlgmr.msrb.gmra.mxu0 %v1978_v55 }
 0x1c5   : > { %v2378_v20 = vpop.f32.mrf.mxu3 }
 0x1c6   : > { %v2379_v54 = vadd.f32 %v2378_v20, %v2045_v38 }
 0x1ca   : > { %2475 = vmatmul.bf16.vlgmr.msra.gmra.mxu0 %v1978_v55 }
 0x1cd   : > { %v2380_v50 = vpop.f32.mrf.mxu3 }
 0x1ce   : > { %v2381_v42 = vadd.f32 %v2380_v50, %v2045_v38 }
 0x1dd   : > { %v2392_v24 = vpop.f32.mrf.mxu1 }
 0x1de   : > { %v2393_v47 = vadd.f32 %v2392_v24, %v2379_v54 }
 0x1e5   : > { %v2394_v26 = vpop.f32.mrf.mxu1  ;;  %v2434_v30 = vpop.f32.mrf.mxu3 }
 0x1e6   : > { %v2435_v35 = vadd.f32 %v2434_v30, %v2046_v31  ;;  %v2395_v62 = vadd.f32 %v2394_v26, %v2381_v42 }
 0x1ed   : > { %v2448_v32 = vpop.f32.mrf.mxu1  ;;  %v2436_v33 = vpop.f32.mrf.mxu3 }
 0x1ee   : > { %v2449_v36 = vadd.f32 %v2448_v32, %v2435_v35  ;;  %v2437_v45 = vadd.f32 %v2436_v33, %v2046_v31 }
 0x1f5   : > { %v2450_v44 = vpop.f32.mrf.mxu1 }
 0x1f6   : > { %v2451_v49 = vadd.f32 %v2450_v44, %v2437_v45 }
 0x219   : > { %v2406_v25 = vpop.f32.mrf.mxu2 }
 0x21a   : > { %v2407_v51 = vadd.f32 %v2406_v25, %v2393_v47 }
 0x221   : > { %v2408_v27 = vpop.f32.mrf.mxu2 }
 0x222   : > { %v2409_v1 = vadd.f32 %v2408_v27, %v2395_v62 }
 0x229   : > { %v2462_v34 = vpop.f32.mrf.mxu2 }
 0x22a   : > { %v2463_v39 = vadd.f32 %v2462_v34, %v2449_v36 }
 0x231   : > { %v2464_v48 = vpop.f32.mrf.mxu2 }
 0x232   : > { %v2465_v52 = vadd.f32 %v2464_v48, %v2451_v49 }
 0x237   : > { %v2420_v28 = vpop.f32.mrf.mxu0 }
 0x238   : > { %v2421_v53 = vadd.f32 %v2420_v28, %v2407_v51 }
 0x23a   : > { %v2496_v18 = vmul.f32 %v2421_v53, %v2421_v53 }
 0x23f   : > { %v2422_v8 = vpop.f32.mrf.mxu0 }
 0x240   : > { %v2423_v4 = vadd.f32 %v2422_v8, %v2409_v1 }
 0x242   : > { %v2497_v10 = vmul.f32 %v2423_v4, %v2423_v4 }
 0x247   : > { %v2476_v40 = vpop.f32.mrf.mxu0 }
 0x248   : > { %v2477_v41 = vadd.f32 %v2476_v40, %v2463_v39 }
 0x24a   : > { %v2481_v46 = vmul.f32 1.442695, %v2477_v41 }
 0x24c   : > { %4077 = vpow2.f32 %v2481_v46 }
 0x24f   : > { %v2478_v60 = vpop.f32.mrf.mxu0 }
 0x250   : > { %v2479_v56 = vadd.f32 %v2478_v60, %v2465_v52 }
 0x252   : > { %v4078_v58 = vpop.eup %4077  ;;  %v2483_v59 = vmul.f32 1.442695, %v2479_v56 }
 0x253   : > { %v2494_v61 = vmul.f32 %v4078_v58, %v4078_v58  ;;  %v2487_v63 = vmul.f32 %v4078_v58, %v2485_v57 }
 0x254   : > { %4079 = vpow2.f32 %v2483_v59 }
 0x255   : > { %v2498_v2 = vadd.f32 %v2496_v18, %v2494_v61  ;;  %v2489_v3 = vadd.f32 %v2487_v63, %v2421_v53 }
 0x257   : > { %v2500_v5 = vsub.f32 %v2498_v2, %v2477_v41 }
 0x259   : > { %v3715_v9 = vadd.f32 -0.5, %v2500_v5 }
 0x25a   : > { %v4080_v7 = vpop.eup %4079 }
 0x25b   : > { %v2495_v11 = vmul.f32 %v4080_v7, %v4080_v7  ;;  %v2504_v43 = vsel %vm2493_vm1, %v3715_v9, 0.0  ;;  %v2488_v12 = vmul.f32 %v4080_v7, %v2486_v6 }
 0x25c   : > { %2506 = vadd.xlane.f32.xlu0 %v2504_v43 }
 0x25d   : > { %v2499_v13 = vadd.f32 %v2497_v10, %v2495_v11  ;;  %v2490_v14 = vadd.f32 %v2488_v12, %v2423_v4 }
 0x25f   : > { %v2501_v15 = vsub.f32 %v2499_v13, %v2479_v56 }
 0x261   : > { %v3716_v16 = vadd.f32 -0.5, %v2501_v15 }
 0x263   : > { %v2505_v17 = vsel %vm2493_vm1, %v3716_v16, 0.0 }
 0x264   : > { %2508 = vadd.xlane.f32.xlu0 %v2505_v17 }
 0x2cf   : > { %v2507_v19 = vpop.xlane.xlu0 %2506 }
 0x2d0   : > { %v2511_v21 = vsel %vm2510_vm2, %v2507_v19, %v2489_v3 }
 0x2d1   : > { %2513 = vst [vmem:[%s359_s7] sm:$0xff] %v2511_v21 }
 0x2d7   : > { %v2509_v22 = vpop.xlane.xlu0 %2508 }
 0x2d8   : > { %v2512_v23 = vsel %vm2510_vm2, %v2509_v22, %v2490_v14 }
 0x2d9   : > { %2514 = vst [vmem:[%s359_s7 + $0x8] sm:$0xff] %v2512_v23 }
 0x2da   : > { %4258 = shalt.err (!%p4255_p0)
}
 0x2db   : > { %s4320_s14 = smov 128   ;;  %s4321_s2 = smov 8  }
 0x2dc   : > { %4003 = dma.vmem_to_hbm [thread:$0]  (%p4430_p7), %s2529_s9, 256, %s2531_s26, %s2516_s0, %s4320_s14, %s4320_s14, %s4321_s2  }
 0x2dd PF: > { %s2545_s13 = sand.u32 1, %s4297_s21   ;;  %p4668_p3 = scmp.ge.s32.totalorder %s4309_s24, 2 }
 0x2de   : > { %s2546_s1 = scalar_lea.sflag [#allocation4], %s2545_s13 }
 0x2df   : > { %p4023_p9 = pnand %p4668_p3, %p4392_p6 }
 0x2e1   : > { %p4024_p8 = pneg %p4023_p9 }
 0x2e3   : > { %4292 = dma.done.wait (%p4024_p8), %s2546_s1, 256  }
 0x2e4   : > { %4294 = vsyncadd (%p4024_p8), %s2546_s1, 4294967040  ;;  %s4669_s24 = sld [smem:[#allocation18_spill]]  ;;  %s4672_s21 = smov %s4301_s22 }
 0x2e5   : > { %s4670_s8 = sld [smem:[#allocation17_spill]] }
 0x2e6   : > { %s4671_s23 = sld [smem:[#allocation19_spill]] }
 0x2ea   : > { %p21_p12 = scmp.ge.s32.totalorder %s4669_s24, 4  }
 0x2eb   : > { %s4673_s22 = smov %s4670_s8 }
 0x2ec   :  { %23 = sbr.rel (!%p21_p12) target bundleno = 11 (0xb), region = 112 }
 0x2f1   :  { %2552 = vsyncpa [#allocation3], 1 }
 0x2f2   :  { %2554 = vsyncpa [#allocation3 + $0x1], 1 }
 0x2f3   :  { %2555 = vsyncpa [#allocation6], 1 }
 0x2f4   :  { %2556 = vsyncpa [#allocation9], 1 }
 0x2f5   :  { %2557 = vsyncpa [#allocation4], 1 }
 0x2f6   :  { %2559 = vsyncpa [#allocation4 + $0x1], 1 }

</bundles_post_ra>
